<compile_context>
chip_gen: v6e
topology: v6e:2x2x1
jax: 0.10.0
libtpu: 0.0.40
codegen_flags: <defaults>
</compile_context>

<pallas_src>
import functools

import numpy as np
import jax
import jax.numpy as jnp
from jax.experimental import pallas as pl
from jax.experimental.pallas import tpu as pltpu


def _round_up(x, m):
    return ((x + m - 1) // m) * m


def _stft_rows_kernel(sig_ref, basis_ref, out_ref, *, n_frames, hop, n_fft, f_pad):
    """One tile of signal rows -> magnitude spectrogram (rows, time, f_pad).

    Overlapping frames are extracted in-kernel from the resident signal tile
    (static slices), each frame does a single fused cos|sin MXU matmul, and the
    magnitude is written as full 128-lane stores.
    """
    basis = basis_ref[...]                                  # (n_fft, 2*f_pad)
    sig = sig_ref[...]                                      # (rn, l_pad)
    for t in range(n_frames):                               # static unroll
        frame = sig[:, t * hop: t * hop + n_fft]            # (rn, n_fft)
        d = jnp.dot(frame, basis, preferred_element_type=jnp.float32)  # (rn, 2*f_pad)
        real = d[:, :f_pad]                                 # lane-aligned split
        imag = d[:, f_pad:]
        out_ref[:, t, :] = jnp.sqrt(real * real + imag * imag)


def stft_magnitude_pallas(xp, basis, *, n_fft, hop, n_frames, f_pad, rn):
    """xp: (N_pad, L_pad) reflect-padded signal rows; basis: (n_fft, 2*f_pad)."""
    n_rows, l_pad = xp.shape
    assert n_rows % rn == 0, (n_rows, rn)
    kernel = functools.partial(_stft_rows_kernel, n_frames=n_frames, hop=hop,
                               n_fft=n_fft, f_pad=f_pad)
    return pl.pallas_call(
        kernel,
        out_shape=jax.ShapeDtypeStruct((n_rows, n_frames, f_pad), jnp.float32),
        grid_spec=pltpu.PrefetchScalarGridSpec(
            num_scalar_prefetch=0,
            grid=(n_rows // rn,),
            in_specs=[
                pl.BlockSpec((rn, l_pad), lambda i: (i, 0)),          # signal rows
                pl.BlockSpec((n_fft, 2 * f_pad), lambda i: (0, 0)),   # fused basis (resident)
            ],
            out_specs=pl.BlockSpec((rn, n_frames, f_pad), lambda i: (i, 0, 0)),
        ),
        compiler_params=pltpu.CompilerParams(
            dimension_semantics=("parallel",)),
    )(xp, basis)


class SpecTransform:
    """JAX/Pallas equivalent of gnet's SpecTransform wrapping an nnAudio STFT."""

    def __init__(self, n_fft=64, hop_length=16, freq_bins=None):
        self.n_fft = n_fft
        self.hop = hop_length
        self.freq_bins = (n_fft // 2 + 1) if freq_bins is None else freq_bins
        self.f_pad = _round_up(self.freq_bins, 128)   # lane-dense output width
        # Deterministic (non-learned) Fourier basis, identical to nnAudio's
        # create_fourier_kernels with a periodic hann window.
        n = np.arange(n_fft)
        window = 0.5 - 0.5 * np.cos(2.0 * np.pi * n / n_fft)          # hann, fftbins
        k = np.arange(self.freq_bins)[None, :]                        # (1, F)
        s = n[:, None]                                                # (n_fft, 1)
        ang = 2.0 * np.pi * k * s / n_fft
        cos_b = (np.cos(ang) * window[:, None]).astype(np.float32)    # (n_fft, F)
        sin_b = (np.sin(ang) * window[:, None]).astype(np.float32)    # (n_fft, F)
        fused = np.zeros((n_fft, 2 * self.f_pad), np.float32)         # cos | sin, padded
        fused[:, :self.freq_bins] = cos_b
        fused[:, self.f_pad:self.f_pad + self.freq_bins] = sin_b
        self.basis = jnp.asarray(fused)
        self.cos_basis = jnp.asarray(cos_b)   # for the pure-JAX reference
        self.sin_basis = jnp.asarray(sin_b)

    def __call__(self, x):
        # x: (b, len, samples)   -- mirrors torch forward's (b, len, _)
        b, l, samples = x.shape
        n_rows = b * l
        x = x.reshape(n_rows, samples).astype(jnp.float32)            # flatten(0, 1)
        # nnAudio STFT: center=True, reflect padding by n_fft//2
        # (requires samples > n_fft//2, as in nnAudio / torch reflect pad)
        pad = self.n_fft // 2
        xp = jnp.pad(x, ((0, 0), (pad, pad)), mode="reflect")
        l_pad = samples + 2 * pad
        n_frames = (l_pad - self.n_fft) // self.hop + 1

        # Row tile: multiple of 8, up to 64 rows, capped so the double-buffered
        # output block stays small (safe for v5e/v6e/v7x VMEM alike).
        rn = min(64, _round_up(n_rows, 8))
        while rn > 8 and rn * n_frames * self.f_pad * 4 > (2 << 20):
            rn = _round_up(rn // 2, 8)
        n_rows_pad = _round_up(n_rows, rn)
        if n_rows_pad != n_rows:
            xp = jnp.pad(xp, ((0, n_rows_pad - n_rows), (0, 0)))

        mag = stft_magnitude_pallas(xp, self.basis, n_fft=self.n_fft,
                                    hop=self.hop, n_frames=n_frames,
                                    f_pad=self.f_pad, rn=rn)
        mag = mag[:n_rows, :, :self.freq_bins]                        # drop row/freq padding
        mag = mag.reshape(b, l, n_frames, self.freq_bins)             # unflatten(0,(b,len))
        # nnAudio 'Magnitude' output is (batch, freq_bins, time) -> (b, len, F, T)
        return jnp.transpose(mag, (0, 1, 3, 2))

    # Pure-JAX reference (no Pallas) for correctness check.
    def reference(self, x):
        b, l, samples = x.shape
        x = x.reshape(b * l, samples)
        pad = self.n_fft // 2
        xp = jnp.pad(x, ((0, 0), (pad, pad)), mode="reflect")
        n_frames = (xp.shape[1] - self.n_fft) // self.hop + 1
        idx = (jnp.arange(n_frames)[:, None] * self.hop
               + jnp.arange(self.n_fft)[None, :])
        frames = xp[:, idx].astype(jnp.float32)                       # (N, T, n_fft)
        real = jnp.einsum("ntf,fk->ntk", frames, self.cos_basis)
        imag = jnp.einsum("ntf,fk->ntk", frames, self.sin_basis)
        mag = jnp.sqrt(real * real + imag * imag)
        mag = mag.reshape(b, l, n_frames, self.freq_bins)
        return jnp.transpose(mag, (0, 1, 3, 2))


if __name__ == "__main__":
    key = jax.random.PRNGKey(0)
    b, seq_len, samples = 2, 4, 256
    x = jax.random.normal(key, (b, seq_len, samples), dtype=jnp.float32)

    model = SpecTransform(n_fft=64, hop_length=16)
    out = jax.block_until_ready(model(x))

    n_frames = (samples + 2 * (64 // 2) - 64) // 16 + 1   # 17
    assert out.shape == (b, seq_len, 33, n_frames), out.shape

    ref = jax.block_until_ready(model.reference(x))
    np.testing.assert_allclose(np.asarray(out), np.asarray(ref), rtol=1e-4, atol=1e-4)

    print("KERNEL_OK")
</pallas_src>

<mosaic_0001>
module attributes {stable_mosaic.version = 11 : i64} {
  func.func @_stft_rows_kernel(%arg0: i32, %arg1: memref<8x320xf32, #tpu.memory_space<vmem>>, %arg2: memref<64x256xf32, #tpu.memory_space<vmem>>, %arg3: memref<8x17x128xf32, #tpu.memory_space<vmem>>) attributes {dimension_semantics = [#tpu.dimension_semantics<parallel>], iteration_bounds = array<i64: 1>, scalar_prefetch = 0 : i64, scratch_operands = 0 : i64, tpu.core_type = #tpu.core_type<tc>, window_params = [{transform_indices = @transform_0, window_bounds = array<i64: 8, 320>}, {pipeline_mode = #tpu.pipeline_mode<synchronous>, transform_indices = @transform_1, window_bounds = array<i64: 64, 256>}, {transform_indices = @transform_2, window_bounds = array<i64: 8, 17, 128>}]} {
    %c0 = arith.constant 0 : index
    %c0_0 = arith.constant 0 : index
    %0 = vector.load %arg2[%c0, %c0_0] : memref<64x256xf32, #tpu.memory_space<vmem>>, vector<64x256xf32>
    %c0_1 = arith.constant 0 : index
    %c0_2 = arith.constant 0 : index
    %1 = vector.load %arg1[%c0_1, %c0_2] : memref<8x320xf32, #tpu.memory_space<vmem>>, vector<8x320xf32>
    %2 = vector.extract_strided_slice %1 {offsets = [0, 0], sizes = [8, 64], strides = [1, 1]} : vector<8x320xf32> to vector<8x64xf32>
    %cst = arith.constant dense<0.000000e+00> : vector<8x256xf32>
    %3 = tpu.matmul %2, %0, %cst {dimension_numbers = #tpu.dot_dimension_numbers<[1], [0], [0], [1], [0, 0, 1, 1], [], []>} : vector<8x64xf32>, vector<64x256xf32>, vector<8x256xf32> -> vector<8x256xf32>
    %4 = vector.extract_strided_slice %3 {offsets = [0, 0], sizes = [8, 128], strides = [1, 1]} : vector<8x256xf32> to vector<8x128xf32>
    %5 = vector.extract_strided_slice %3 {offsets = [0, 128], sizes = [8, 128], strides = [1, 1]} : vector<8x256xf32> to vector<8x128xf32>
    %6 = arith.mulf %4, %4 : vector<8x128xf32>
    %7 = arith.mulf %5, %5 : vector<8x128xf32>
    %8 = arith.addf %6, %7 : vector<8x128xf32>
    %9 = math.sqrt %8 : vector<8x128xf32>
    %c0_3 = arith.constant 0 : index
    %c0_4 = arith.constant 0 : index
    %c0_5 = arith.constant 0 : index
    %10 = vector.load %arg3[%c0_3, %c0_4, %c0_5] : memref<8x17x128xf32, #tpu.memory_space<vmem>>, vector<8x1x128xf32>
    %11 = vector.shape_cast %10 : vector<8x1x128xf32> to vector<8x128xf32>
    %12 = vector.shape_cast %9 : vector<8x128xf32> to vector<8x1x128xf32>
    tpu.vector_store %arg3[%c0_3, %c0_4, %c0_5], %12 {strides = array<i32>} : memref<8x17x128xf32, #tpu.memory_space<vmem>>, vector<8x1x128xf32>,
    %13 = vector.extract_strided_slice %1 {offsets = [0, 16], sizes = [8, 64], strides = [1, 1]} : vector<8x320xf32> to vector<8x64xf32>
    %cst_6 = arith.constant dense<0.000000e+00> : vector<8x256xf32>
    %14 = tpu.matmul %13, %0, %cst_6 {dimension_numbers = #tpu.dot_dimension_numbers<[1], [0], [0], [1], [0, 0, 1, 1], [], []>} : vector<8x64xf32>, vector<64x256xf32>, vector<8x256xf32> -> vector<8x256xf32>
    %15 = vector.extract_strided_slice %14 {offsets = [0, 0], sizes = [8, 128], strides = [1, 1]} : vector<8x256xf32> to vector<8x128xf32>
    %16 = vector.extract_strided_slice %14 {offsets = [0, 128], sizes = [8, 128], strides = [1, 1]} : vector<8x256xf32> to vector<8x128xf32>
    %17 = arith.mulf %15, %15 : vector<8x128xf32>
    %18 = arith.mulf %16, %16 : vector<8x128xf32>
    %19 = arith.addf %17, %18 : vector<8x128xf32>
    %20 = math.sqrt %19 : vector<8x128xf32>
    %c0_7 = arith.constant 0 : index
    %c1 = arith.constant 1 : index
    %c0_8 = arith.constant 0 : index
    %21 = vector.load %arg3[%c0_7, %c1, %c0_8] : memref<8x17x128xf32, #tpu.memory_space<vmem>>, vector<8x1x128xf32>
    %22 = vector.shape_cast %21 : vector<8x1x128xf32> to vector<8x128xf32>
    %23 = vector.shape_cast %20 : vector<8x128xf32> to vector<8x1x128xf32>
    tpu.vector_store %arg3[%c0_7, %c1, %c0_8], %23 {strides = array<i32>} : memref<8x17x128xf32, #tpu.memory_space<vmem>>, vector<8x1x128xf32>,
    %24 = vector.extract_strided_slice %1 {offsets = [0, 32], sizes = [8, 64], strides = [1, 1]} : vector<8x320xf32> to vector<8x64xf32>
    %cst_9 = arith.constant dense<0.000000e+00> : vector<8x256xf32>
    %25 = tpu.matmul %24, %0, %cst_9 {dimension_numbers = #tpu.dot_dimension_numbers<[1], [0], [0], [1], [0, 0, 1, 1], [], []>} : vector<8x64xf32>, vector<64x256xf32>, vector<8x256xf32> -> vector<8x256xf32>
    %26 = vector.extract_strided_slice %25 {offsets = [0, 0], sizes = [8, 128], strides = [1, 1]} : vector<8x256xf32> to vector<8x128xf32>
    %27 = vector.extract_strided_slice %25 {offsets = [0, 128], sizes = [8, 128], strides = [1, 1]} : vector<8x256xf32> to vector<8x128xf32>
    %28 = arith.mulf %26, %26 : vector<8x128xf32>
    %29 = arith.mulf %27, %27 : vector<8x128xf32>
    %30 = arith.addf %28, %29 : vector<8x128xf32>
    %31 = math.sqrt %30 : vector<8x128xf32>
    %c0_10 = arith.constant 0 : index
    %c2 = arith.constant 2 : index
    %c0_11 = arith.constant 0 : index
    %32 = vector.load %arg3[%c0_10, %c2, %c0_11] : memref<8x17x128xf32, #tpu.memory_space<vmem>>, vector<8x1x128xf32>
    %33 = vector.shape_cast %32 : vector<8x1x128xf32> to vector<8x128xf32>
    %34 = vector.shape_cast %31 : vector<8x128xf32> to vector<8x1x128xf32>
    tpu.vector_store %arg3[%c0_10, %c2, %c0_11], %34 {strides = array<i32>} : memref<8x17x128xf32, #tpu.memory_space<vmem>>, vector<8x1x128xf32>,
    %35 = vector.extract_strided_slice %1 {offsets = [0, 48], sizes = [8, 64], strides = [1, 1]} : vector<8x320xf32> to vector<8x64xf32>
    %cst_12 = arith.constant dense<0.000000e+00> : vector<8x256xf32>
    %36 = tpu.matmul %35, %0, %cst_12 {dimension_numbers = #tpu.dot_dimension_numbers<[1], [0], [0], [1], [0, 0, 1, 1], [], []>} : vector<8x64xf32>, vector<64x256xf32>, vector<8x256xf32> -> vector<8x256xf32>
    %37 = vector.extract_strided_slice %36 {offsets = [0, 0], sizes = [8, 128], strides = [1, 1]} : vector<8x256xf32> to vector<8x128xf32>
    %38 = vector.extract_strided_slice %36 {offsets = [0, 128], sizes = [8, 128], strides = [1, 1]} : vector<8x256xf32> to vector<8x128xf32>
    %39 = arith.mulf %37, %37 : vector<8x128xf32>
    %40 = arith.mulf %38, %38 : vector<8x128xf32>
    %41 = arith.addf %39, %40 : vector<8x128xf32>
    %42 = math.sqrt %41 : vector<8x128xf32>
    %c0_13 = arith.constant 0 : index
    %c3 = arith.constant 3 : index
    %c0_14 = arith.constant 0 : index
    %43 = vector.load %arg3[%c0_13, %c3, %c0_14] : memref<8x17x128xf32, #tpu.memory_space<vmem>>, vector<8x1x128xf32>
    %44 = vector.shape_cast %43 : vector<8x1x128xf32> to vector<8x128xf32>
    %45 = vector.shape_cast %42 : vector<8x128xf32> to vector<8x1x128xf32>
    tpu.vector_store %arg3[%c0_13, %c3, %c0_14], %45 {strides = array<i32>} : memref<8x17x128xf32, #tpu.memory_space<vmem>>, vector<8x1x128xf32>,
    %46 = vector.extract_strided_slice %1 {offsets = [0, 64], sizes = [8, 64], strides = [1, 1]} : vector<8x320xf32> to vector<8x64xf32>
    %cst_15 = arith.constant dense<0.000000e+00> : vector<8x256xf32>
    %47 = tpu.matmul %46, %0, %cst_15 {dimension_numbers = #tpu.dot_dimension_numbers<[1], [0], [0], [1], [0, 0, 1, 1], [], []>} : vector<8x64xf32>, vector<64x256xf32>, vector<8x256xf32> -> vector<8x256xf32>
    %48 = vector.extract_strided_slice %47 {offsets = [0, 0], sizes = [8, 128], strides = [1, 1]} : vector<8x256xf32> to vector<8x128xf32>
    %49 = vector.extract_strided_slice %47 {offsets = [0, 128], sizes = [8, 128], strides = [1, 1]} : vector<8x256xf32> to vector<8x128xf32>
    %50 = arith.mulf %48, %48 : vector<8x128xf32>
    %51 = arith.mulf %49, %49 : vector<8x128xf32>
    %52 = arith.addf %50, %51 : vector<8x128xf32>
    %53 = math.sqrt %52 : vector<8x128xf32>
    %c0_16 = arith.constant 0 : index
    %c4 = arith.constant 4 : index
    %c0_17 = arith.constant 0 : index
    %54 = vector.load %arg3[%c0_16, %c4, %c0_17] : memref<8x17x128xf32, #tpu.memory_space<vmem>>, vector<8x1x128xf32>
    %55 = vector.shape_cast %54 : vector<8x1x128xf32> to vector<8x128xf32>
    %56 = vector.shape_cast %53 : vector<8x128xf32> to vector<8x1x128xf32>
    tpu.vector_store %arg3[%c0_16, %c4, %c0_17], %56 {strides = array<i32>} : memref<8x17x128xf32, #tpu.memory_space<vmem>>, vector<8x1x128xf32>,
    %57 = vector.extract_strided_slice %1 {offsets = [0, 80], sizes = [8, 64], strides = [1, 1]} : vector<8x320xf32> to vector<8x64xf32>
    %cst_18 = arith.constant dense<0.000000e+00> : vector<8x256xf32>
    %58 = tpu.matmul %57, %0, %cst_18 {dimension_numbers = #tpu.dot_dimension_numbers<[1], [0], [0], [1], [0, 0, 1, 1], [], []>} : vector<8x64xf32>, vector<64x256xf32>, vector<8x256xf32> -> vector<8x256xf32>
    %59 = vector.extract_strided_slice %58 {offsets = [0, 0], sizes = [8, 128], strides = [1, 1]} : vector<8x256xf32> to vector<8x128xf32>
    %60 = vector.extract_strided_slice %58 {offsets = [0, 128], sizes = [8, 128], strides = [1, 1]} : vector<8x256xf32> to vector<8x128xf32>
    %61 = arith.mulf %59, %59 : vector<8x128xf32>
    %62 = arith.mulf %60, %60 : vector<8x128xf32>
    %63 = arith.addf %61, %62 : vector<8x128xf32>
    %64 = math.sqrt %63 : vector<8x128xf32>
    %c0_19 = arith.constant 0 : index
    %c5 = arith.constant 5 : index
    %c0_20 = arith.constant 0 : index
    %65 = vector.load %arg3[%c0_19, %c5, %c0_20] : memref<8x17x128xf32, #tpu.memory_space<vmem>>, vector<8x1x128xf32>
    %66 = vector.shape_cast %65 : vector<8x1x128xf32> to vector<8x128xf32>
    %67 = vector.shape_cast %64 : vector<8x128xf32> to vector<8x1x128xf32>
    tpu.vector_store %arg3[%c0_19, %c5, %c0_20], %67 {strides = array<i32>} : memref<8x17x128xf32, #tpu.memory_space<vmem>>, vector<8x1x128xf32>,
    %68 = vector.extract_strided_slice %1 {offsets = [0, 96], sizes = [8, 64], strides = [1, 1]} : vector<8x320xf32> to vector<8x64xf32>
    %cst_21 = arith.constant dense<0.000000e+00> : vector<8x256xf32>
    %69 = tpu.matmul %68, %0, %cst_21 {dimension_numbers = #tpu.dot_dimension_numbers<[1], [0], [0], [1], [0, 0, 1, 1], [], []>} : vector<8x64xf32>, vector<64x256xf32>, vector<8x256xf32> -> vector<8x256xf32>
    %70 = vector.extract_strided_slice %69 {offsets = [0, 0], sizes = [8, 128], strides = [1, 1]} : vector<8x256xf32> to vector<8x128xf32>
    %71 = vector.extract_strided_slice %69 {offsets = [0, 128], sizes = [8, 128], strides = [1, 1]} : vector<8x256xf32> to vector<8x128xf32>
    %72 = arith.mulf %70, %70 : vector<8x128xf32>
    %73 = arith.mulf %71, %71 : vector<8x128xf32>
    %74 = arith.addf %72, %73 : vector<8x128xf32>
    %75 = math.sqrt %74 : vector<8x128xf32>
    %c0_22 = arith.constant 0 : index
    %c6 = arith.constant 6 : index
    %c0_23 = arith.constant 0 : index
    %76 = vector.load %arg3[%c0_22, %c6, %c0_23] : memref<8x17x128xf32, #tpu.memory_space<vmem>>, vector<8x1x128xf32>
    %77 = vector.shape_cast %76 : vector<8x1x128xf32> to vector<8x128xf32>
    %78 = vector.shape_cast %75 : vector<8x128xf32> to vector<8x1x128xf32>
    tpu.vector_store %arg3[%c0_22, %c6, %c0_23], %78 {strides = array<i32>} : memref<8x17x128xf32, #tpu.memory_space<vmem>>, vector<8x1x128xf32>,
    %79 = vector.extract_strided_slice %1 {offsets = [0, 112], sizes = [8, 64], strides = [1, 1]} : vector<8x320xf32> to vector<8x64xf32>
    %cst_24 = arith.constant dense<0.000000e+00> : vector<8x256xf32>
    %80 = tpu.matmul %79, %0, %cst_24 {dimension_numbers = #tpu.dot_dimension_numbers<[1], [0], [0], [1], [0, 0, 1, 1], [], []>} : vector<8x64xf32>, vector<64x256xf32>, vector<8x256xf32> -> vector<8x256xf32>
    %81 = vector.extract_strided_slice %80 {offsets = [0, 0], sizes = [8, 128], strides = [1, 1]} : vector<8x256xf32> to vector<8x128xf32>
    %82 = vector.extract_strided_slice %80 {offsets = [0, 128], sizes = [8, 128], strides = [1, 1]} : vector<8x256xf32> to vector<8x128xf32>
    %83 = arith.mulf %81, %81 : vector<8x128xf32>
    %84 = arith.mulf %82, %82 : vector<8x128xf32>
    %85 = arith.addf %83, %84 : vector<8x128xf32>
    %86 = math.sqrt %85 : vector<8x128xf32>
    %c0_25 = arith.constant 0 : index
    %c7 = arith.constant 7 : index
    %c0_26 = arith.constant 0 : index
    %87 = vector.load %arg3[%c0_25, %c7, %c0_26] : memref<8x17x128xf32, #tpu.memory_space<vmem>>, vector<8x1x128xf32>
    %88 = vector.shape_cast %87 : vector<8x1x128xf32> to vector<8x128xf32>
    %89 = vector.shape_cast %86 : vector<8x128xf32> to vector<8x1x128xf32>
    tpu.vector_store %arg3[%c0_25, %c7, %c0_26], %89 {strides = array<i32>} : memref<8x17x128xf32, #tpu.memory_space<vmem>>, vector<8x1x128xf32>,
    %90 = vector.extract_strided_slice %1 {offsets = [0, 128], sizes = [8, 64], strides = [1, 1]} : vector<8x320xf32> to vector<8x64xf32>
    %cst_27 = arith.constant dense<0.000000e+00> : vector<8x256xf32>
    %91 = tpu.matmul %90, %0, %cst_27 {dimension_numbers = #tpu.dot_dimension_numbers<[1], [0], [0], [1], [0, 0, 1, 1], [], []>} : vector<8x64xf32>, vector<64x256xf32>, vector<8x256xf32> -> vector<8x256xf32>
    %92 = vector.extract_strided_slice %91 {offsets = [0, 0], sizes = [8, 128], strides = [1, 1]} : vector<8x256xf32> to vector<8x128xf32>
    %93 = vector.extract_strided_slice %91 {offsets = [0, 128], sizes = [8, 128], strides = [1, 1]} : vector<8x256xf32> to vector<8x128xf32>
    %94 = arith.mulf %92, %92 : vector<8x128xf32>
    %95 = arith.mulf %93, %93 : vector<8x128xf32>
    %96 = arith.addf %94, %95 : vector<8x128xf32>
    %97 = math.sqrt %96 : vector<8x128xf32>
    %c0_28 = arith.constant 0 : index
    %c8 = arith.constant 8 : index
    %c0_29 = arith.constant 0 : index
    %98 = vector.load %arg3[%c0_28, %c8, %c0_29] : memref<8x17x128xf32, #tpu.memory_space<vmem>>, vector<8x1x128xf32>
    %99 = vector.shape_cast %98 : vector<8x1x128xf32> to vector<8x128xf32>
    %100 = vector.shape_cast %97 : vector<8x128xf32> to vector<8x1x128xf32>
    tpu.vector_store %arg3[%c0_28, %c8, %c0_29], %100 {strides = array<i32>} : memref<8x17x128xf32, #tpu.memory_space<vmem>>, vector<8x1x128xf32>,
    %101 = vector.extract_strided_slice %1 {offsets = [0, 144], sizes = [8, 64], strides = [1, 1]} : vector<8x320xf32> to vector<8x64xf32>
    %cst_30 = arith.constant dense<0.000000e+00> : vector<8x256xf32>
    %102 = tpu.matmul %101, %0, %cst_30 {dimension_numbers = #tpu.dot_dimension_numbers<[1], [0], [0], [1], [0, 0, 1, 1], [], []>} : vector<8x64xf32>, vector<64x256xf32>, vector<8x256xf32> -> vector<8x256xf32>
    %103 = vector.extract_strided_slice %102 {offsets = [0, 0], sizes = [8, 128], strides = [1, 1]} : vector<8x256xf32> to vector<8x128xf32>
    %104 = vector.extract_strided_slice %102 {offsets = [0, 128], sizes = [8, 128], strides = [1, 1]} : vector<8x256xf32> to vector<8x128xf32>
    %105 = arith.mulf %103, %103 : vector<8x128xf32>
    %106 = arith.mulf %104, %104 : vector<8x128xf32>
    %107 = arith.addf %105, %106 : vector<8x128xf32>
    %108 = math.sqrt %107 : vector<8x128xf32>
    %c0_31 = arith.constant 0 : index
    %c9 = arith.constant 9 : index
    %c0_32 = arith.constant 0 : index
    %109 = vector.load %arg3[%c0_31, %c9, %c0_32] : memref<8x17x128xf32, #tpu.memory_space<vmem>>, vector<8x1x128xf32>
    %110 = vector.shape_cast %109 : vector<8x1x128xf32> to vector<8x128xf32>
    %111 = vector.shape_cast %108 : vector<8x128xf32> to vector<8x1x128xf32>
    tpu.vector_store %arg3[%c0_31, %c9, %c0_32], %111 {strides = array<i32>} : memref<8x17x128xf32, #tpu.memory_space<vmem>>, vector<8x1x128xf32>,
    %112 = vector.extract_strided_slice %1 {offsets = [0, 160], sizes = [8, 64], strides = [1, 1]} : vector<8x320xf32> to vector<8x64xf32>
    %cst_33 = arith.constant dense<0.000000e+00> : vector<8x256xf32>
    %113 = tpu.matmul %112, %0, %cst_33 {dimension_numbers = #tpu.dot_dimension_numbers<[1], [0], [0], [1], [0, 0, 1, 1], [], []>} : vector<8x64xf32>, vector<64x256xf32>, vector<8x256xf32> -> vector<8x256xf32>
    %114 = vector.extract_strided_slice %113 {offsets = [0, 0], sizes = [8, 128], strides = [1, 1]} : vector<8x256xf32> to vector<8x128xf32>
    %115 = vector.extract_strided_slice %113 {offsets = [0, 128], sizes = [8, 128], strides = [1, 1]} : vector<8x256xf32> to vector<8x128xf32>
    %116 = arith.mulf %114, %114 : vector<8x128xf32>
    %117 = arith.mulf %115, %115 : vector<8x128xf32>
    %118 = arith.addf %116, %117 : vector<8x128xf32>
    %119 = math.sqrt %118 : vector<8x128xf32>
    %c0_34 = arith.constant 0 : index
    %c10 = arith.constant 10 : index
    %c0_35 = arith.constant 0 : index
    %120 = vector.load %arg3[%c0_34, %c10, %c0_35] : memref<8x17x128xf32, #tpu.memory_space<vmem>>, vector<8x1x128xf32>
    %121 = vector.shape_cast %120 : vector<8x1x128xf32> to vector<8x128xf32>
    %122 = vector.shape_cast %119 : vector<8x128xf32> to vector<8x1x128xf32>
    tpu.vector_store %arg3[%c0_34, %c10, %c0_35], %122 {strides = array<i32>} : memref<8x17x128xf32, #tpu.memory_space<vmem>>, vector<8x1x128xf32>,
    %123 = vector.extract_strided_slice %1 {offsets = [0, 176], sizes = [8, 64], strides = [1, 1]} : vector<8x320xf32> to vector<8x64xf32>
    %cst_36 = arith.constant dense<0.000000e+00> : vector<8x256xf32>
    %124 = tpu.matmul %123, %0, %cst_36 {dimension_numbers = #tpu.dot_dimension_numbers<[1], [0], [0], [1], [0, 0, 1, 1], [], []>} : vector<8x64xf32>, vector<64x256xf32>, vector<8x256xf32> -> vector<8x256xf32>
    %125 = vector.extract_strided_slice %124 {offsets = [0, 0], sizes = [8, 128], strides = [1, 1]} : vector<8x256xf32> to vector<8x128xf32>
    %126 = vector.extract_strided_slice %124 {offsets = [0, 128], sizes = [8, 128], strides = [1, 1]} : vector<8x256xf32> to vector<8x128xf32>
    %127 = arith.mulf %125, %125 : vector<8x128xf32>
    %128 = arith.mulf %126, %126 : vector<8x128xf32>
    %129 = arith.addf %127, %128 : vector<8x128xf32>
    %130 = math.sqrt %129 : vector<8x128xf32>
    %c0_37 = arith.constant 0 : index
    %c11 = arith.constant 11 : index
    %c0_38 = arith.constant 0 : index
    %131 = vector.load %arg3[%c0_37, %c11, %c0_38] : memref<8x17x128xf32, #tpu.memory_space<vmem>>, vector<8x1x128xf32>
    %132 = vector.shape_cast %131 : vector<8x1x128xf32> to vector<8x128xf32>
    %133 = vector.shape_cast %130 : vector<8x128xf32> to vector<8x1x128xf32>
    tpu.vector_store %arg3[%c0_37, %c11, %c0_38], %133 {strides = array<i32>} : memref<8x17x128xf32, #tpu.memory_space<vmem>>, vector<8x1x128xf32>,
    %134 = vector.extract_strided_slice %1 {offsets = [0, 192], sizes = [8, 64], strides = [1, 1]} : vector<8x320xf32> to vector<8x64xf32>
    %cst_39 = arith.constant dense<0.000000e+00> : vector<8x256xf32>
    %135 = tpu.matmul %134, %0, %cst_39 {dimension_numbers = #tpu.dot_dimension_numbers<[1], [0], [0], [1], [0, 0, 1, 1], [], []>} : vector<8x64xf32>, vector<64x256xf32>, vector<8x256xf32> -> vector<8x256xf32>
    %136 = vector.extract_strided_slice %135 {offsets = [0, 0], sizes = [8, 128], strides = [1, 1]} : vector<8x256xf32> to vector<8x128xf32>
    %137 = vector.extract_strided_slice %135 {offsets = [0, 128], sizes = [8, 128], strides = [1, 1]} : vector<8x256xf32> to vector<8x128xf32>
    %138 = arith.mulf %136, %136 : vector<8x128xf32>
    %139 = arith.mulf %137, %137 : vector<8x128xf32>
    %140 = arith.addf %138, %139 : vector<8x128xf32>
    %141 = math.sqrt %140 : vector<8x128xf32>
    %c0_40 = arith.constant 0 : index
    %c12 = arith.constant 12 : index
    %c0_41 = arith.constant 0 : index
    %142 = vector.load %arg3[%c0_40, %c12, %c0_41] : memref<8x17x128xf32, #tpu.memory_space<vmem>>, vector<8x1x128xf32>
    %143 = vector.shape_cast %142 : vector<8x1x128xf32> to vector<8x128xf32>
    %144 = vector.shape_cast %141 : vector<8x128xf32> to vector<8x1x128xf32>
    tpu.vector_store %arg3[%c0_40, %c12, %c0_41], %144 {strides = array<i32>} : memref<8x17x128xf32, #tpu.memory_space<vmem>>, vector<8x1x128xf32>,
    %145 = vector.extract_strided_slice %1 {offsets = [0, 208], sizes = [8, 64], strides = [1, 1]} : vector<8x320xf32> to vector<8x64xf32>
    %cst_42 = arith.constant dense<0.000000e+00> : vector<8x256xf32>
    %146 = tpu.matmul %145, %0, %cst_42 {dimension_numbers = #tpu.dot_dimension_numbers<[1], [0], [0], [1], [0, 0, 1, 1], [], []>} : vector<8x64xf32>, vector<64x256xf32>, vector<8x256xf32> -> vector<8x256xf32>
    %147 = vector.extract_strided_slice %146 {offsets = [0, 0], sizes = [8, 128], strides = [1, 1]} : vector<8x256xf32> to vector<8x128xf32>
    %148 = vector.extract_strided_slice %146 {offsets = [0, 128], sizes = [8, 128], strides = [1, 1]} : vector<8x256xf32> to vector<8x128xf32>
    %149 = arith.mulf %147, %147 : vector<8x128xf32>
    %150 = arith.mulf %148, %148 : vector<8x128xf32>
    %151 = arith.addf %149, %150 : vector<8x128xf32>
    %152 = math.sqrt %151 : vector<8x128xf32>
    %c0_43 = arith.constant 0 : index
    %c13 = arith.constant 13 : index
    %c0_44 = arith.constant 0 : index
    %153 = vector.load %arg3[%c0_43, %c13, %c0_44] : memref<8x17x128xf32, #tpu.memory_space<vmem>>, vector<8x1x128xf32>
    %154 = vector.shape_cast %153 : vector<8x1x128xf32> to vector<8x128xf32>
    %155 = vector.shape_cast %152 : vector<8x128xf32> to vector<8x1x128xf32>
    tpu.vector_store %arg3[%c0_43, %c13, %c0_44], %155 {strides = array<i32>} : memref<8x17x128xf32, #tpu.memory_space<vmem>>, vector<8x1x128xf32>,
    %156 = vector.extract_strided_slice %1 {offsets = [0, 224], sizes = [8, 64], strides = [1, 1]} : vector<8x320xf32> to vector<8x64xf32>
    %cst_45 = arith.constant dense<0.000000e+00> : vector<8x256xf32>
    %157 = tpu.matmul %156, %0, %cst_45 {dimension_numbers = #tpu.dot_dimension_numbers<[1], [0], [0], [1], [0, 0, 1, 1], [], []>} : vector<8x64xf32>, vector<64x256xf32>, vector<8x256xf32> -> vector<8x256xf32>
    %158 = vector.extract_strided_slice %157 {offsets = [0, 0], sizes = [8, 128], strides = [1, 1]} : vector<8x256xf32> to vector<8x128xf32>
    %159 = vector.extract_strided_slice %157 {offsets = [0, 128], sizes = [8, 128], strides = [1, 1]} : vector<8x256xf32> to vector<8x128xf32>
    %160 = arith.mulf %158, %158 : vector<8x128xf32>
    %161 = arith.mulf %159, %159 : vector<8x128xf32>
    %162 = arith.addf %160, %161 : vector<8x128xf32>
    %163 = math.sqrt %162 : vector<8x128xf32>
    %c0_46 = arith.constant 0 : index
    %c14 = arith.constant 14 : index
    %c0_47 = arith.constant 0 : index
    %164 = vector.load %arg3[%c0_46, %c14, %c0_47] : memref<8x17x128xf32, #tpu.memory_space<vmem>>, vector<8x1x128xf32>
    %165 = vector.shape_cast %164 : vector<8x1x128xf32> to vector<8x128xf32>
    %166 = vector.shape_cast %163 : vector<8x128xf32> to vector<8x1x128xf32>
    tpu.vector_store %arg3[%c0_46, %c14, %c0_47], %166 {strides = array<i32>} : memref<8x17x128xf32, #tpu.memory_space<vmem>>, vector<8x1x128xf32>,
    %167 = vector.extract_strided_slice %1 {offsets = [0, 240], sizes = [8, 64], strides = [1, 1]} : vector<8x320xf32> to vector<8x64xf32>
    %cst_48 = arith.constant dense<0.000000e+00> : vector<8x256xf32>
    %168 = tpu.matmul %167, %0, %cst_48 {dimension_numbers = #tpu.dot_dimension_numbers<[1], [0], [0], [1], [0, 0, 1, 1], [], []>} : vector<8x64xf32>, vector<64x256xf32>, vector<8x256xf32> -> vector<8x256xf32>
    %169 = vector.extract_strided_slice %168 {offsets = [0, 0], sizes = [8, 128], strides = [1, 1]} : vector<8x256xf32> to vector<8x128xf32>
    %170 = vector.extract_strided_slice %168 {offsets = [0, 128], sizes = [8, 128], strides = [1, 1]} : vector<8x256xf32> to vector<8x128xf32>
    %171 = arith.mulf %169, %169 : vector<8x128xf32>
    %172 = arith.mulf %170, %170 : vector<8x128xf32>
    %173 = arith.addf %171, %172 : vector<8x128xf32>
    %174 = math.sqrt %173 : vector<8x128xf32>
    %c0_49 = arith.constant 0 : index
    %c15 = arith.constant 15 : index
    %c0_50 = arith.constant 0 : index
    %175 = vector.load %arg3[%c0_49, %c15, %c0_50] : memref<8x17x128xf32, #tpu.memory_space<vmem>>, vector<8x1x128xf32>
    %176 = vector.shape_cast %175 : vector<8x1x128xf32> to vector<8x128xf32>
    %177 = vector.shape_cast %174 : vector<8x128xf32> to vector<8x1x128xf32>
    tpu.vector_store %arg3[%c0_49, %c15, %c0_50], %177 {strides = array<i32>} : memref<8x17x128xf32, #tpu.memory_space<vmem>>, vector<8x1x128xf32>,
    %178 = vector.extract_strided_slice %1 {offsets = [0, 256], sizes = [8, 64], strides = [1, 1]} : vector<8x320xf32> to vector<8x64xf32>
    %cst_51 = arith.constant dense<0.000000e+00> : vector<8x256xf32>
    %179 = tpu.matmul %178, %0, %cst_51 {dimension_numbers = #tpu.dot_dimension_numbers<[1], [0], [0], [1], [0, 0, 1, 1], [], []>} : vector<8x64xf32>, vector<64x256xf32>, vector<8x256xf32> -> vector<8x256xf32>
    %180 = vector.extract_strided_slice %179 {offsets = [0, 0], sizes = [8, 128], strides = [1, 1]} : vector<8x256xf32> to vector<8x128xf32>
    %181 = vector.extract_strided_slice %179 {offsets = [0, 128], sizes = [8, 128], strides = [1, 1]} : vector<8x256xf32> to vector<8x128xf32>
    %182 = arith.mulf %180, %180 : vector<8x128xf32>
    %183 = arith.mulf %181, %181 : vector<8x128xf32>
    %184 = arith.addf %182, %183 : vector<8x128xf32>
    %185 = math.sqrt %184 : vector<8x128xf32>
    %c0_52 = arith.constant 0 : index
    %c16 = arith.constant 16 : index
    %c0_53 = arith.constant 0 : index
    %186 = vector.load %arg3[%c0_52, %c16, %c0_53] : memref<8x17x128xf32, #tpu.memory_space<vmem>>, vector<8x1x128xf32>
    %187 = vector.shape_cast %186 : vector<8x1x128xf32> to vector<8x128xf32>
    %188 = vector.shape_cast %185 : vector<8x128xf32> to vector<8x1x128xf32>
    tpu.vector_store %arg3[%c0_52, %c16, %c0_53], %188 {strides = array<i32>} : memref<8x17x128xf32, #tpu.memory_space<vmem>>, vector<8x1x128xf32>,
    return
  }
  func.func @transform_0(%arg0: i32) -> (i32, i32) {
    %c0_i32 = arith.constant 0 : i32
    %c0_i32_0 = arith.constant 0 : i32
    return %arg0, %c0_i32 : i32, i32
  }
  func.func @transform_1(%arg0: i32) -> (i32, i32) {
    %c0_i32 = arith.constant 0 : i32
    %c0_i32_0 = arith.constant 0 : i32
    %c0_i32_1 = arith.constant 0 : i32
    return %c0_i32, %c0_i32_0 : i32, i32
  }
  func.func @transform_2(%arg0: i32) -> (i32, i32, i32) {
    %c0_i32 = arith.constant 0 : i32
    %c0_i32_0 = arith.constant 0 : i32
    %c0_i32_1 = arith.constant 0 : i32
    return %arg0, %c0_i32, %c0_i32_0 : i32, i32, i32
  }
}

</mosaic_0001>

<bundles_post_ra>
// kernel: tpu_custom_call.1
= control target key start
LH: loop header
LB: loop body
LE: loop exit
PB: predicated region body
PF: predicated region fallthrough
CT: control target
= control target key end

     0   :  { %7 = vsyncpa [#allocation3], 0  ;;  %s3900_s0 = inlined_call_operand.hbm [shape: f32[8,320], index: 0, kind: input, shape index: {}]   ;;  %s3901_s1 = inlined_call_operand.hbm [shape: f32[64,256], index: 1, kind: input, shape index: {}]   ;;  %s3902_s2 = inlined_call_operand.vmem [shape: f32[8,17,128], index: 2, kind: output, shape index: {}]  }
   0x1   :  { %8 = vsyncpa [#allocation5], 0  ;;  %s2817_s9 = smov [#allocation2]   ;;  %s2818_s11 = smov [#allocation4]  }
   0x2   :  { %s15_s10 = sshll.u32 %s2817_s9, 4  ;;  %s24_s12 = sshll.u32 %s2818_s11, 4  ;;  %s16_s10 = int_to_ptr.vmem [resolvable:$true] %s15_s10  ;;  %s25_s12 = int_to_ptr.vmem [resolvable:$true] %s24_s12 }
   0x3   :  { %s2781_s13 = scalar_lea.vmem %s16_s10, 384  ;;  %p2786_p1 = scmp.lt.s32.totalorder %s16_s10, %s16_s10 }
   0x4   :  { %p2782_p0 = scmp.ne.s32.totalorder %s16_s10, %s2781_s13  ;;  %p2787_p2 = scmp.lt.s32.totalorder %s2781_s13, %s2781_s13 }
   0x6   :  { %p2788_p3 = por %p2787_p2, %p2786_p1 }
   0x8   :  { %p2789_p4 = pnand %p2788_p3, %p2782_p0 }
   0xa   :  { %2792 = shalt.err (!%p2789_p4)
}
   0xb   :  { %18 = dma.hbm_to_vmem [thread:$0]  %s3900_s0, 384, %s16_s10, [#allocation3]  }
   0xc   :  { %s2801_s16 = scalar_lea.vmem %s25_s12, 2048  ;;  %p2806_p6 = scmp.lt.s32.totalorder %s25_s12, %s25_s12 }
   0xd   :  { %p2802_p5 = scmp.ne.s32.totalorder %s25_s12, %s2801_s16  ;;  %p2807_p7 = scmp.lt.s32.totalorder %s2801_s16, %s2801_s16 }
   0xf   :  { %p2808_p8 = por %p2807_p7, %p2806_p6 }
  0x11   :  { %p2809_p9 = pnand %p2808_p8, %p2802_p5 }
  0x13   :  { %2812 = shalt.err (!%p2809_p9)
}
  0x14   :  { %s2819_s17 = smov 256   ;;  %s2820_s18 = smov 16  }
  0x15   :  { %30 = dma.hbm_to_vmem [thread:$0]  %s3901_s1, 2048, %s25_s12, [#allocation5], %s2819_s17, %s2819_s17, %s2820_s18  }
  0x16   :  { %2813 = dma.done.wait [#allocation3], 384  }
  0x17   :  { %2814 = vsyncadd [#allocation3], 4294966912 }
  0x18   :  { %2815 = dma.done.wait [#allocation5], 2048  }
  0x19   :  { %2816 = vsyncadd [#allocation5], 4294965248  ;;  %v2821_v0 = vmov 0.0   ;;  %v2853_v1 = vld [vmem:[#allocation2] sm:$0xff]  ;;  %s2822_s0 = smov 112   ;;  %s2823_s21 = smov 80   ;;  %v146_v50 = vlaneseq }
  0x1a   :  { %124 = vmatprep.mubr.f32.mxu0 %v2821_v0  ;;  %275 = vmatprep.mubr.f32.mxu1 %v2821_v0  ;;  %v2859_v2 = vld [vmem:[#allocation4 + $0x78] sm:$0xff]  ;;  %v2861_v3 = vld [vmem:[#allocation4 + $0x70] sm:$0xff]  ;;  %v2863_v4 = vld [vmem:[#allocation4 + $0x68] sm:$0xff]  ;;  %s2824_s1 = smov 96   ;;  %s2825_s22 = smov 64   ;;  %vm56_vm0 = vcmask 523264  }
  0x1b   :  { %207 = vrot.lane.b32.xlu0 %v2853_v1, %s2822_s0  ;;  %509 = vrot.lane.b32.xlu1 %v2853_v1, %s2823_s21  ;;  %v2868_v5 = vld [vmem:[#allocation4 + $0x60] sm:$0xff]  ;;  %v2872_v6 = vld [vmem:[#allocation4 + $0x58] sm:$0xff]  ;;  %v2879_v7 = vld [vmem:[#allocation4 + $0x50] sm:$0xff]  ;;  %s2826_s23 = smov 48   ;;  %s2827_s24 = smov 32   ;;  %vm816_vm1 = vcmask 392192  }
  0x1c   :  { %76 = vmatprep.subr.mxu0 %v2859_v2  ;;  %227 = vmatprep.subr.mxu1 %v2859_v2  ;;  %v2881_v8 = vld [vmem:[#allocation2 + $0x8] sm:$0xff]  ;;  %v2886_v9 = vld [vmem:[#allocation4 + $0x48] sm:$0xff]  ;;  %v2890_v10 = vld [vmem:[#allocation4 + $0x40] sm:$0xff]  ;;  %vm971_vm2 = vcmask 261120   ;;  %vm1126_vm3 = vcmask 130048   ;;  %v147_v52 = vshrl.u32 %v146_v50, 7 }
  0x1d   :  { %77 = vmatpush1.msra.mxu0 %v2861_v3  ;;  %228 = vmatpush1.msra.mxu1 %v2861_v3  ;;  %v2897_v11 = vld [vmem:[#allocation4 + $0x38] sm:$0xff]  ;;  %v2902_v12 = vld [vmem:[#allocation4 + $0x30] sm:$0xff]  ;;  %v2906_v13 = vld [vmem:[#allocation4 + $0x28] sm:$0xff]  ;;  %v2828_v48 = vmov 1966171168  }
  0x1e   :  { %78 = vmatprep.subr.mxu0 %v2863_v4  ;;  %229 = vmatprep.subr.mxu1 %v2863_v4  ;;  %v2913_v14 = vld [vmem:[#allocation4 + $0x20] sm:$0xff]  ;;  %v2918_v15 = vld [vmem:[#allocation4 + $0x18] sm:$0xff]  ;;  %v2922_v16 = vld [vmem:[#allocation4 + $0x10] sm:$0xff]  ;;  %v144_v49 = vunpack.c.l.s4 %v2828_v48 }
  0x1f   :  { %358 = vrot.lane.b32.xlu0 %v2853_v1, %s2824_s1  ;;  %660 = vrot.lane.b32.xlu1 %v2853_v1, %s2825_s22  ;;  %v2929_v17 = vld [vmem:[#allocation4 + $0x8] sm:$0xff]  ;;  %v2934_v18 = vld [vmem:[#allocation4] sm:$0xff]  ;;  %v2954_v19 = vld [vmem:[#allocation2 + $0x10] sm:$0xff] }
  0x20   :  { %79 = vmatpush1.msra.mxu0 %v2868_v5  ;;  %230 = vmatpush1.msra.mxu1 %v2868_v5  ;;  %v145_v51 = vunpack.c.0.s8 %v144_v49 }
  0x21   :  { %80 = vmatprep.subr.mxu0 %v2872_v6  ;;  %231 = vmatprep.subr.mxu1 %v2872_v6 }
  0x22   :  { %81 = vmatpush1.msra.mxu0 %v2879_v7  ;;  %232 = vmatpush1.msra.mxu1 %v2879_v7  ;;  %v3261_v56 = vsub.s32 %v145_v51, %v147_v52 }
  0x23   :  { %812 = vrot.lane.b32.xlu0 %v2853_v1, %s2826_s23  ;;  %814 = vrot.lane.b32.xlu1 %v2881_v8, %s2826_s23 }
  0x24   :  { %82 = vmatprep.subr.mxu0 %v2886_v9  ;;  %233 = vmatprep.subr.mxu1 %v2886_v9 }
  0x25   :  { %83 = vmatpush1.msra.mxu0 %v2890_v10  ;;  %234 = vmatpush1.msra.mxu1 %v2890_v10 }
  0x26   :  { %84 = vmatprep.subr.mxu0 %v2897_v11  ;;  %235 = vmatprep.subr.mxu1 %v2897_v11 }
  0x27   :  { %967 = vrot.lane.b32.xlu0 %v2853_v1, %s2827_s24  ;;  %969 = vrot.lane.b32.xlu1 %v2881_v8, %s2827_s24 }
  0x28   :  { %85 = vmatpush1.msra.mxu0 %v2902_v12  ;;  %236 = vmatpush1.msra.mxu1 %v2902_v12 }
  0x29   :  { %86 = vmatprep.subr.mxu0 %v2906_v13  ;;  %237 = vmatprep.subr.mxu1 %v2906_v13 }
  0x2a   :  { %87 = vmatpush1.msra.mxu0 %v2913_v14  ;;  %238 = vmatpush1.msra.mxu1 %v2913_v14 }
  0x2b   :  { %1122 = vrot.lane.b32.xlu0 %v2853_v1, %s2820_s18  ;;  %1124 = vrot.lane.b32.xlu1 %v2881_v8, %s2820_s18 }
  0x2c   :  { %88 = vmatprep.subr.mxu0 %v2918_v15  ;;  %239 = vmatprep.subr.mxu1 %v2918_v15 }
  0x2d   :  { %89 = vmatpush1.msra.mxu0 %v2922_v16  ;;  %240 = vmatpush1.msra.mxu1 %v2922_v16 }
  0x2e   :  { %90 = vmatprep.subr.mxu0 %v2929_v17  ;;  %241 = vmatprep.subr.mxu1 %v2929_v17 }
  0x2f   :  { %1426 = vrot.lane.b32.xlu0 %v2881_v8, %s2822_s0  ;;  %1577 = vrot.lane.b32.xlu1 %v2881_v8, %s2824_s1 }
  0x30   :  { %91 = vmatpush1.msra.mxu0 %v2934_v18  ;;  %242 = vmatpush1.msra.mxu1 %v2934_v18 }
  0x31   :  { %2642 = vmatmul.mubr.msk.f32.vlgmr.msra.gmra.mxu0 %vm56_vm0, %v2853_v1  ;;  %378 = vmatprep.subr.mxu0 %v2859_v2 }
  0x32   :  { %379 = vmatpush1.msra.mxu0 %v2861_v3  ;;  %529 = vmatprep.subr.mxu1 %v2859_v2 }
  0x33   :  { %1728 = vrot.lane.b32.xlu0 %v2881_v8, %s2823_s21  ;;  %1879 = vrot.lane.b32.xlu1 %v2881_v8, %s2825_s22 }
  0x34   :  { %380 = vmatprep.subr.mxu0 %v2863_v4  ;;  %426 = vmatprep.mubr.f32.mxu0 %v2821_v0 }
  0x35   :  { %381 = vmatpush1.msra.mxu0 %v2868_v5 }
  0x36   :  { %382 = vmatprep.subr.mxu0 %v2872_v6 }
  0x37   :  { %2031 = vrot.lane.b32.xlu0 %v2954_v19, %s2826_s23  ;;  %2183 = vrot.lane.b32.xlu1 %v2954_v19, %s2827_s24 }
  0x38   :  { %383 = vmatpush1.msra.mxu0 %v2879_v7 }
  0x39   :  { %384 = vmatprep.subr.mxu0 %v2886_v9 }
  0x3a   :  { %385 = vmatpush1.msra.mxu0 %v2890_v10 }
  0x3b   :  { %2335 = vrot.lane.b32.xlu0 %v2954_v19, %s2820_s18  ;;  %386 = vmatprep.subr.mxu0 %v2897_v11 }
  0x3c   :  { %387 = vmatpush1.msra.mxu0 %v2902_v12 }
  0x3d   :  { %388 = vmatprep.subr.mxu0 %v2906_v13 }
  0x3e   :  { %389 = vmatpush1.msra.mxu0 %v2913_v14 }
  0x3f   :  { %390 = vmatprep.subr.mxu0 %v2918_v15 }
  0x40   :  { %391 = vmatpush1.msra.mxu0 %v2922_v16 }
  0x41   :  { %392 = vmatprep.subr.mxu0 %v2929_v17 }
  0x42   :  { %393 = vmatpush1.msra.mxu0 %v2934_v18 }
  0x43   :  { %680 = vmatprep.subr.mxu0 %v2859_v2 }
  0x8d   :  { %v208_v20 = vpop.permute.xlu0 %207  ;;  %v510_v21 = vpop.permute.xlu1 %509 }
  0x8e   :  { %2647 = vmatmul.mubr.msk.f32.vlgmr.msra.gmra.mxu1 %vm56_vm0, %v208_v20 }
  0x8f   :  { %530 = vmatpush1.msra.mxu1 %v2861_v3  ;;  %577 = vmatprep.mubr.f32.mxu1 %v2821_v0 }
  0x90   :  { %531 = vmatprep.subr.mxu1 %v2863_v4 }
  0x91   :  { %532 = vmatpush1.msra.mxu1 %v2868_v5  ;;  %v359_v22 = vpop.permute.xlu0 %358  ;;  %v661_v23 = vpop.permute.xlu1 %660 }
  0x92   :  { %533 = vmatprep.subr.mxu1 %v2872_v6  ;;  %2652 = vmatmul.mubr.msk.f32.vlgmr.msra.gmra.mxu0 %vm56_vm0, %v359_v22 }
  0x93   :  { %534 = vmatpush1.msra.mxu1 %v2879_v7  ;;  %681 = vmatpush1.msra.mxu0 %v2861_v3 }
  0x94   :  { %535 = vmatprep.subr.mxu1 %v2886_v9  ;;  %682 = vmatprep.subr.mxu0 %v2863_v4 }
  0x95   :  { %536 = vmatpush1.msra.mxu1 %v2890_v10  ;;  %683 = vmatpush1.msra.mxu0 %v2868_v5  ;;  %v2991_v24 = vpop.permute.xlu0 %812  ;;  %v815_v25 = vpop.permute.xlu1 %814 }
  0x96   :  { %537 = vmatprep.subr.mxu1 %v2897_v11  ;;  %684 = vmatprep.subr.mxu0 %v2872_v6  ;;  %v817_v38 = vsel %vm816_vm1, %v2991_v24, %v815_v25 }
  0x97   :  { %538 = vmatpush1.msra.mxu1 %v2902_v12  ;;  %685 = vmatpush1.msra.mxu0 %v2879_v7 }
  0x98   :  { %539 = vmatprep.subr.mxu1 %v2906_v13  ;;  %686 = vmatprep.subr.mxu0 %v2886_v9 }
  0x99   :  { %540 = vmatpush1.msra.mxu1 %v2913_v14  ;;  %687 = vmatpush1.msra.mxu0 %v2890_v10  ;;  %v3001_v26 = vpop.permute.xlu0 %967  ;;  %v3003_v27 = vpop.permute.xlu1 %969 }
  0x9a   :  { %541 = vmatprep.subr.mxu1 %v2918_v15  ;;  %688 = vmatprep.subr.mxu0 %v2897_v11  ;;  %v972_v41 = vsel %vm971_vm2, %v3001_v26, %v3003_v27 }
  0x9b   :  { %542 = vmatpush1.msra.mxu1 %v2922_v16  ;;  %689 = vmatpush1.msra.mxu0 %v2902_v12 }
  0x9c   :  { %543 = vmatprep.subr.mxu1 %v2929_v17  ;;  %690 = vmatprep.subr.mxu0 %v2906_v13 }
  0x9d   :  { %544 = vmatpush1.msra.mxu1 %v2934_v18  ;;  %691 = vmatpush1.msra.mxu0 %v2913_v14  ;;  %v3013_v28 = vpop.permute.xlu0 %1122  ;;  %v3015_v29 = vpop.permute.xlu1 %1124 }
  0x9e   :  { %2657 = vmatmul.mubr.msk.f32.vlgmr.msra.gmra.mxu1 %vm56_vm0, %v510_v21  ;;  %692 = vmatprep.subr.mxu0 %v2918_v15  ;;  %v1127_v42 = vsel %vm1126_vm3, %v3013_v28, %v3015_v29 }
  0x9f   :  { %836 = vmatprep.subr.mxu1 %v2859_v2  ;;  %693 = vmatpush1.msra.mxu0 %v2922_v16 }
  0xa0   :  { %837 = vmatpush1.msra.mxu1 %v2861_v3  ;;  %694 = vmatprep.subr.mxu0 %v2929_v17 }
  0xa1   :  { %838 = vmatprep.subr.mxu1 %v2863_v4  ;;  %695 = vmatpush1.msra.mxu0 %v2934_v18  ;;  %v3025_v30 = vpop.permute.xlu0 %1426  ;;  %v3027_v31 = vpop.permute.xlu1 %1577 }
  0xa2   :  { %728 = vmatprep.mubr.f32.mxu0 %v2821_v0  ;;  %839 = vmatpush1.msra.mxu1 %v2868_v5 }
  0xa3   :  { %2662 = vmatmul.mubr.msk.f32.vlgmr.msra.gmra.mxu0 %vm56_vm0, %v661_v23  ;;  %840 = vmatprep.subr.mxu1 %v2872_v6 }
  0xa4   :  { %991 = vmatprep.subr.mxu0 %v2859_v2  ;;  %841 = vmatpush1.msra.mxu1 %v2879_v7 }
  0xa5   :  { %992 = vmatpush1.msra.mxu0 %v2861_v3  ;;  %842 = vmatprep.subr.mxu1 %v2886_v9  ;;  %v3037_v32 = vpop.permute.xlu0 %1728  ;;  %v3039_v33 = vpop.permute.xlu1 %1879 }
  0xa6   :  { %993 = vmatprep.subr.mxu0 %v2863_v4  ;;  %843 = vmatpush1.msra.mxu1 %v2890_v10 }
  0xa7   :  { %994 = vmatpush1.msra.mxu0 %v2868_v5  ;;  %844 = vmatprep.subr.mxu1 %v2897_v11 }
  0xa8   :  { %995 = vmatprep.subr.mxu0 %v2872_v6  ;;  %845 = vmatpush1.msra.mxu1 %v2902_v12 }
  0xa9   :  { %996 = vmatpush1.msra.mxu0 %v2879_v7  ;;  %846 = vmatprep.subr.mxu1 %v2906_v13  ;;  %v2032_v34 = vpop.permute.xlu0 %2031  ;;  %v2184_v35 = vpop.permute.xlu1 %2183 }
  0xaa   :  { %997 = vmatprep.subr.mxu0 %v2886_v9  ;;  %847 = vmatpush1.msra.mxu1 %v2913_v14  ;;  %v3052_v36 = vsel %vm816_vm1, %v815_v25, %v2032_v34  ;;  %v3056_v37 = vsel %vm971_vm2, %v3003_v27, %v2184_v35 }
  0xab   :  { %998 = vmatpush1.msra.mxu0 %v2890_v10  ;;  %848 = vmatprep.subr.mxu1 %v2918_v15 }
  0xac   :  { %999 = vmatprep.subr.mxu0 %v2897_v11  ;;  %849 = vmatpush1.msra.mxu1 %v2922_v16 }
  0xad   :  { %1000 = vmatpush1.msra.mxu0 %v2902_v12  ;;  %850 = vmatprep.subr.mxu1 %v2929_v17  ;;  %v2336_v39 = vpop.permute.xlu0 %2335 }
  0xae   :  { %1001 = vmatprep.subr.mxu0 %v2906_v13  ;;  %851 = vmatpush1.msra.mxu1 %v2934_v18  ;;  %v3070_v40 = vsel %vm1126_vm3, %v3015_v29, %v2336_v39 }
  0xaf   :  { %884 = vmatprep.mubr.f32.mxu1 %v2821_v0  ;;  %1002 = vmatpush1.msra.mxu0 %v2913_v14 }
  0xb0   :  { %2667 = vmatmul.mubr.msk.f32.vlgmr.msra.gmra.mxu1 %vm56_vm0, %v817_v38  ;;  %1003 = vmatprep.subr.mxu0 %v2918_v15 }
  0xb1   :  { %1146 = vmatprep.subr.mxu1 %v2859_v2  ;;  %1004 = vmatpush1.msra.mxu0 %v2922_v16 }
  0xb2   :  { %1147 = vmatpush1.msra.mxu1 %v2861_v3  ;;  %1005 = vmatprep.subr.mxu0 %v2929_v17 }
  0xb3   :  { %1148 = vmatprep.subr.mxu1 %v2863_v4  ;;  %1006 = vmatpush1.msra.mxu0 %v2934_v18 }
  0xb4   :  { %1039 = vmatprep.mubr.f32.mxu0 %v2821_v0  ;;  %1149 = vmatpush1.msra.mxu1 %v2868_v5 }
  0xb5   :  { %2672 = vmatmul.mubr.msk.f32.vlgmr.msra.gmra.mxu0 %vm56_vm0, %v972_v41  ;;  %1150 = vmatprep.subr.mxu1 %v2872_v6 }
  0xb6   :  { %1295 = vmatprep.subr.mxu0 %v2859_v2  ;;  %1151 = vmatpush1.msra.mxu1 %v2879_v7 }
  0xb7   :  { %1296 = vmatpush1.msra.mxu0 %v2861_v3  ;;  %1152 = vmatprep.subr.mxu1 %v2886_v9 }
  0xb8   :  { %1297 = vmatprep.subr.mxu0 %v2863_v4  ;;  %1153 = vmatpush1.msra.mxu1 %v2890_v10 }
  0xb9   :  { %1298 = vmatpush1.msra.mxu0 %v2868_v5  ;;  %1154 = vmatprep.subr.mxu1 %v2897_v11 }
  0xba   :  { %1299 = vmatprep.subr.mxu0 %v2872_v6  ;;  %1155 = vmatpush1.msra.mxu1 %v2902_v12 }
  0xbb   :  { %1300 = vmatpush1.msra.mxu0 %v2879_v7  ;;  %1156 = vmatprep.subr.mxu1 %v2906_v13 }
  0xbc   :  { %1301 = vmatprep.subr.mxu0 %v2886_v9  ;;  %1157 = vmatpush1.msra.mxu1 %v2913_v14 }
  0xbd   :  { %1302 = vmatpush1.msra.mxu0 %v2890_v10  ;;  %1158 = vmatprep.subr.mxu1 %v2918_v15 }
  0xbe   :  { %1303 = vmatprep.subr.mxu0 %v2897_v11  ;;  %1159 = vmatpush1.msra.mxu1 %v2922_v16 }
  0xbf   :  { %1304 = vmatpush1.msra.mxu0 %v2902_v12  ;;  %1160 = vmatprep.subr.mxu1 %v2929_v17 }
  0xc0   :  { %1305 = vmatprep.subr.mxu0 %v2906_v13  ;;  %1161 = vmatpush1.msra.mxu1 %v2934_v18 }
  0xc1   :  { %1194 = vmatprep.mubr.f32.mxu1 %v2821_v0  ;;  %1306 = vmatpush1.msra.mxu0 %v2913_v14 }
  0xc2   :  { %2677 = vmatmul.mubr.msk.f32.vlgmr.msra.gmra.mxu1 %vm56_vm0, %v1127_v42  ;;  %1307 = vmatprep.subr.mxu0 %v2918_v15 }
  0xc3   :  { %1446 = vmatprep.subr.mxu1 %v2859_v2  ;;  %1308 = vmatpush1.msra.mxu0 %v2922_v16 }
  0xc4   :  { %1447 = vmatpush1.msra.mxu1 %v2861_v3  ;;  %1309 = vmatprep.subr.mxu0 %v2929_v17 }
  0xc5   :  { %1448 = vmatprep.subr.mxu1 %v2863_v4  ;;  %1310 = vmatpush1.msra.mxu0 %v2934_v18 }
  0xc6   :  { %1343 = vmatprep.mubr.f32.mxu0 %v2821_v0  ;;  %1449 = vmatpush1.msra.mxu1 %v2868_v5 }
  0xc7   :  { %2682 = vmatmul.mubr.msk.f32.vlgmr.msra.gmra.mxu0 %vm56_vm0, %v2881_v8  ;;  %1450 = vmatprep.subr.mxu1 %v2872_v6 }
  0xc8   :  { %1597 = vmatprep.subr.mxu0 %v2859_v2  ;;  %1451 = vmatpush1.msra.mxu1 %v2879_v7 }
  0xc9   :  { %1598 = vmatpush1.msra.mxu0 %v2861_v3  ;;  %1452 = vmatprep.subr.mxu1 %v2886_v9 }
  0xca   :  { %1599 = vmatprep.subr.mxu0 %v2863_v4  ;;  %1453 = vmatpush1.msra.mxu1 %v2890_v10 }
  0xcb   :  { %1600 = vmatpush1.msra.mxu0 %v2868_v5  ;;  %1454 = vmatprep.subr.mxu1 %v2897_v11 }
  0xcc   :  { %1601 = vmatprep.subr.mxu0 %v2872_v6  ;;  %1455 = vmatpush1.msra.mxu1 %v2902_v12 }
  0xcd   :  { %1602 = vmatpush1.msra.mxu0 %v2879_v7  ;;  %1456 = vmatprep.subr.mxu1 %v2906_v13 }
  0xce   :  { %1603 = vmatprep.subr.mxu0 %v2886_v9  ;;  %1457 = vmatpush1.msra.mxu1 %v2913_v14 }
  0xcf   :  { %1604 = vmatpush1.msra.mxu0 %v2890_v10  ;;  %1458 = vmatprep.subr.mxu1 %v2918_v15 }
  0xd0   :  { %1605 = vmatprep.subr.mxu0 %v2897_v11  ;;  %1459 = vmatpush1.msra.mxu1 %v2922_v16 }
  0xd1   :  { %1606 = vmatpush1.msra.mxu0 %v2902_v12  ;;  %1460 = vmatprep.subr.mxu1 %v2929_v17 }
  0xd2   :  { %1607 = vmatprep.subr.mxu0 %v2906_v13  ;;  %1461 = vmatpush1.msra.mxu1 %v2934_v18 }
  0xd3   :  { %1494 = vmatprep.mubr.f32.mxu1 %v2821_v0  ;;  %1608 = vmatpush1.msra.mxu0 %v2913_v14 }
  0xd4   :  { %2687 = vmatmul.mubr.msk.f32.vlgmr.msra.gmra.mxu1 %vm56_vm0, %v3025_v30  ;;  %1609 = vmatprep.subr.mxu0 %v2918_v15 }
  0xd5   :  { %1748 = vmatprep.subr.mxu1 %v2859_v2  ;;  %1610 = vmatpush1.msra.mxu0 %v2922_v16 }
  0xd6   :  { %1749 = vmatpush1.msra.mxu1 %v2861_v3  ;;  %1611 = vmatprep.subr.mxu0 %v2929_v17 }
  0xd7   :  { %1750 = vmatprep.subr.mxu1 %v2863_v4  ;;  %1612 = vmatpush1.msra.mxu0 %v2934_v18 }
  0xd8   :  { %1645 = vmatprep.mubr.f32.mxu0 %v2821_v0  ;;  %1751 = vmatpush1.msra.mxu1 %v2868_v5 }
  0xd9   :  { %2692 = vmatmul.mubr.msk.f32.vlgmr.msra.gmra.mxu0 %vm56_vm0, %v3027_v31  ;;  %1752 = vmatprep.subr.mxu1 %v2872_v6 }
  0xda   :  { %1899 = vmatprep.subr.mxu0 %v2859_v2  ;;  %1753 = vmatpush1.msra.mxu1 %v2879_v7 }
  0xdb   :  { %1900 = vmatpush1.msra.mxu0 %v2861_v3  ;;  %1754 = vmatprep.subr.mxu1 %v2886_v9 }
  0xdc   :  { %1901 = vmatprep.subr.mxu0 %v2863_v4  ;;  %1755 = vmatpush1.msra.mxu1 %v2890_v10 }
  0xdd   :  { %1902 = vmatpush1.msra.mxu0 %v2868_v5  ;;  %1756 = vmatprep.subr.mxu1 %v2897_v11 }
  0xde   :  { %1903 = vmatprep.subr.mxu0 %v2872_v6  ;;  %1757 = vmatpush1.msra.mxu1 %v2902_v12 }
  0xdf   :  { %1904 = vmatpush1.msra.mxu0 %v2879_v7  ;;  %1758 = vmatprep.subr.mxu1 %v2906_v13 }
  0xe0   :  { %1905 = vmatprep.subr.mxu0 %v2886_v9  ;;  %1759 = vmatpush1.msra.mxu1 %v2913_v14 }
  0xe1   :  { %1906 = vmatpush1.msra.mxu0 %v2890_v10  ;;  %1760 = vmatprep.subr.mxu1 %v2918_v15 }
  0xe2   :  { %1907 = vmatprep.subr.mxu0 %v2897_v11  ;;  %1761 = vmatpush1.msra.mxu1 %v2922_v16 }
  0xe3   :  { %1908 = vmatpush1.msra.mxu0 %v2902_v12  ;;  %1762 = vmatprep.subr.mxu1 %v2929_v17 }
  0xe4   :  { %1909 = vmatprep.subr.mxu0 %v2906_v13  ;;  %1763 = vmatpush1.msra.mxu1 %v2934_v18 }
  0xe5   :  { %1796 = vmatprep.mubr.f32.mxu1 %v2821_v0  ;;  %1910 = vmatpush1.msra.mxu0 %v2913_v14 }
  0xe6   :  { %2697 = vmatmul.mubr.msk.f32.vlgmr.msra.gmra.mxu1 %vm56_vm0, %v3037_v32  ;;  %1911 = vmatprep.subr.mxu0 %v2918_v15 }
  0xe7   :  { %2052 = vmatprep.subr.mxu1 %v2859_v2  ;;  %1912 = vmatpush1.msra.mxu0 %v2922_v16 }
  0xe8   :  { %2053 = vmatpush1.msra.mxu1 %v2861_v3  ;;  %1913 = vmatprep.subr.mxu0 %v2929_v17 }
  0xe9   :  { %2054 = vmatprep.subr.mxu1 %v2863_v4  ;;  %1914 = vmatpush1.msra.mxu0 %v2934_v18 }
  0xea   :  { %1947 = vmatprep.mubr.f32.mxu0 %v2821_v0  ;;  %2055 = vmatpush1.msra.mxu1 %v2868_v5 }
  0xeb   :  { %2702 = vmatmul.mubr.msk.f32.vlgmr.msra.gmra.mxu0 %vm56_vm0, %v3039_v33  ;;  %2056 = vmatprep.subr.mxu1 %v2872_v6 }
  0xec   :  { %2204 = vmatprep.subr.mxu0 %v2859_v2  ;;  %2057 = vmatpush1.msra.mxu1 %v2879_v7 }
  0xed   :  { %2205 = vmatpush1.msra.mxu0 %v2861_v3  ;;  %2058 = vmatprep.subr.mxu1 %v2886_v9 }
  0xee   :  { %2206 = vmatprep.subr.mxu0 %v2863_v4  ;;  %2059 = vmatpush1.msra.mxu1 %v2890_v10 }
  0xef   :  { %2207 = vmatpush1.msra.mxu0 %v2868_v5  ;;  %2060 = vmatprep.subr.mxu1 %v2897_v11 }
  0xf0   :  { %2208 = vmatprep.subr.mxu0 %v2872_v6  ;;  %2061 = vmatpush1.msra.mxu1 %v2902_v12 }
  0xf1   :  { %2209 = vmatpush1.msra.mxu0 %v2879_v7  ;;  %2062 = vmatprep.subr.mxu1 %v2906_v13  ;;  %v126_v43 = vpop.f32.mrf.mxu0 }
  0xf2   :  { %2210 = vmatprep.subr.mxu0 %v2886_v9  ;;  %2063 = vmatpush1.msra.mxu1 %v2913_v14  ;;  %v131_v44 = vmul.f32 %v126_v43, %v126_v43 }
  0xf3   :  { %2211 = vmatpush1.msra.mxu0 %v2890_v10  ;;  %2064 = vmatprep.subr.mxu1 %v2918_v15  ;;  %v128_v45 = vpop.f32.mrf.mxu0 }
  0xf4   :  { %2212 = vmatprep.subr.mxu0 %v2897_v11  ;;  %2065 = vmatpush1.msra.mxu1 %v2922_v16  ;;  %v132_v46 = vmul.f32 %v128_v45, %v128_v45 }
  0xf5   :  { %2213 = vmatpush1.msra.mxu0 %v2902_v12  ;;  %2066 = vmatprep.subr.mxu1 %v2929_v17 }
  0xf6   :  { %2214 = vmatprep.subr.mxu0 %v2906_v13  ;;  %2067 = vmatpush1.msra.mxu1 %v2934_v18  ;;  %v133_v47 = vadd.f32 %v132_v46, %v131_v44 }
  0xf7   :  { %2100 = vmatprep.mubr.f32.mxu1 %v2821_v0  ;;  %2215 = vmatpush1.msra.mxu0 %v2913_v14 }
  0xf8   :  { %2707 = vmatmul.mubr.msk.f32.vlgmr.msra.gmra.mxu1 %vm56_vm0, %v3052_v36  ;;  %2216 = vmatprep.subr.mxu0 %v2918_v15  ;;  %2739 = vrsqrt.f32 %v133_v47  ;;  %vm136_vm4 = vcmp.eq.f32.partialorder %v133_v47, inf  ;;  %v139_v54 = vand.u32 2147483648, %v133_v47  ;;  %vm138_vm5 = vcmp.eq.f32.partialorder %v133_v47, 0.0 }
  0xf9   :  { %2356 = vmatprep.subr.mxu1 %v2859_v2  ;;  %2217 = vmatpush1.msra.mxu0 %v2922_v16 }
  0xfa   :  { %2357 = vmatpush1.msra.mxu1 %v2861_v3  ;;  %2218 = vmatprep.subr.mxu0 %v2929_v17 }
  0xfb   :  { %2358 = vmatprep.subr.mxu1 %v2863_v4  ;;  %2219 = vmatpush1.msra.mxu0 %v2934_v18 }
  0xfc   :  { %2252 = vmatprep.mubr.f32.mxu0 %v2821_v0  ;;  %2359 = vmatpush1.msra.mxu1 %v2868_v5 }
  0xfd   :  { %2712 = vmatmul.mubr.msk.f32.vlgmr.msra.gmra.mxu0 %vm56_vm0, %v3056_v37  ;;  %2360 = vmatprep.subr.mxu1 %v2872_v6 }
  0xfe   :  { %2505 = vmatprep.subr.mxu0 %v2859_v2  ;;  %2361 = vmatpush1.msra.mxu1 %v2879_v7 }
  0xff   :  { %2506 = vmatpush1.msra.mxu0 %v2861_v3  ;;  %2362 = vmatprep.subr.mxu1 %v2886_v9 }
 0x100   :  { %2507 = vmatprep.subr.mxu0 %v2863_v4  ;;  %2363 = vmatpush1.msra.mxu1 %v2890_v10 }
 0x101   :  { %2508 = vmatpush1.msra.mxu0 %v2868_v5  ;;  %2364 = vmatprep.subr.mxu1 %v2897_v11 }
 0x102   :  { %2509 = vmatprep.subr.mxu0 %v2872_v6  ;;  %2365 = vmatpush1.msra.mxu1 %v2902_v12 }
 0x103   :  { %2510 = vmatpush1.msra.mxu0 %v2879_v7  ;;  %2366 = vmatprep.subr.mxu1 %v2906_v13 }
 0x104   :  { %2511 = vmatprep.subr.mxu0 %v2886_v9  ;;  %2367 = vmatpush1.msra.mxu1 %v2913_v14 }
 0x105   :  { %v2740_v53 = vpop.eup %2739  ;;  %2512 = vmatpush1.msra.mxu0 %v2890_v10  ;;  %2368 = vmatprep.subr.mxu1 %v2918_v15 }
 0x106   :  { %2513 = vmatprep.subr.mxu0 %v2897_v11  ;;  %2369 = vmatpush1.msra.mxu1 %v2922_v16  ;;  %v135_v55 = vmul.f32 %v2740_v53, %v133_v47 }
 0x107   :  { %2514 = vmatpush1.msra.mxu0 %v2902_v12  ;;  %2370 = vmatprep.subr.mxu1 %v2929_v17 }
 0x108   :  { %2515 = vmatprep.subr.mxu0 %v2906_v13  ;;  %2371 = vmatpush1.msra.mxu1 %v2934_v18  ;;  %v137_v57 = vsel %vm136_vm4, %v133_v47, %v135_v55 }
 0x109   :  { %2404 = vmatprep.mubr.f32.mxu1 %v2821_v0  ;;  %2516 = vmatpush1.msra.mxu0 %v2913_v14  ;;  %v140_v58 = vsel %vm138_vm5, %v139_v54, %v137_v57 }
 0x10a   :  { %2717 = vmatmul.mubr.msk.f32.vlgmr.msra.gmra.mxu1 %vm56_vm0, %v3070_v40  ;;  %2517 = vmatprep.subr.mxu0 %v2918_v15  ;;  %v142_v59 = vcombine.high %v140_v58, %v140_v58  ;;  %v149_v60 = vrot.slane %v140_v58, %v3261_v56 }
 0x10b   :  { %2518 = vmatpush1.msra.mxu0 %v2922_v16  ;;  %2553 = vmatprep.mubr.f32.mxu0 %v2821_v0 }
 0x10c   :  { %2519 = vmatprep.subr.mxu0 %v2929_v17  ;;  %v156_v61 = vrot.slane %v142_v59, %v3261_v56  ;;  %v157_v62 = vcombine.high %v149_v60, %v149_v60  ;;  %v165_v63 = vrot.slane %v149_v60, %v3261_v56  ;;  %2643 = vst.sshfl [vmem:[%s3902_s2] sm:$0x1 pattern:$0x73625140] %v149_v60 }
 0x10d   :  { %2520 = vmatpush1.msra.mxu0 %v2934_v18 }
 0x10e   :  { %2722 = vmatmul.mubr.msk.f32.vlgmr.msra.gmra.mxu0 %vm56_vm0, %v2954_v19  ;;  %v158_v1 = vcombine.high %v156_v61, %v156_v61  ;;  %v172_v2 = vrot.slane %v156_v61, %v3261_v56  ;;  %v179_v0 = vrot.slane %v157_v62, %v3261_v56  ;;  %v187_v3 = vcombine.high %v165_v63, %v165_v63 }
 0x10f   :  { %2644 = vst.sshfl [vmem:[%s3902_s2 + $0x18] sm:$0x1 pattern:$0x73625140] %v157_v62 }
 0x110   :  { %2645 = vst.sshfl [vmem:[%s3902_s2 + $0x60] sm:$0x1 pattern:$0x73625140] %v156_v61  ;;  %v186_v4 = vrot.slane %v158_v1, %v3261_v56  ;;  %v188_v5 = vcombine.high %v172_v2, %v172_v2  ;;  %v189_v6 = vcombine.high %v179_v0, %v179_v0  ;;  %201 = vst [vmem:[%s3902_s2 + $0x30] sm:$0x1] %v187_v3 }
 0x111   :  { %2646 = vst.sshfl [vmem:[%s3902_s2 + $0x78] sm:$0x1 pattern:$0x73625140] %v158_v1 }
 0x112   :  { %v190_v7 = vcombine.high %v186_v4, %v186_v4  ;;  %202 = vst [vmem:[%s3902_s2 + $0x48] sm:$0x1] %v189_v6  ;;  %205 = vst [vmem:[%s3902_s2 + $0x90] sm:$0x1] %v188_v5 }
 0x114   :  { %206 = vst [vmem:[%s3902_s2 + $0xa8] sm:$0x1] %v190_v7 }
 0x14e   :  { %v277_v8 = vpop.f32.mrf.mxu1 }
 0x14f   :  { %v282_v10 = vmul.f32 %v277_v8, %v277_v8 }
 0x150   :  { %v279_v9 = vpop.f32.mrf.mxu1 }
 0x151   :  { %v283_v11 = vmul.f32 %v279_v9, %v279_v9 }
 0x152   :  { %v428_v12 = vpop.f32.mrf.mxu0 }
 0x153   :  { %v284_v13 = vadd.f32 %v283_v11, %v282_v10  ;;  %v433_v15 = vmul.f32 %v428_v12, %v428_v12 }
 0x154   :  { %v430_v14 = vpop.f32.mrf.mxu0 }
 0x155   :  { %2741 = vrsqrt.f32 %v284_v13  ;;  %v434_v16 = vmul.f32 %v430_v14, %v430_v14  ;;  %vm287_vm6 = vcmp.eq.f32.partialorder %v284_v13, inf  ;;  %v290_v26 = vand.u32 2147483648, %v284_v13 }
 0x156   :  { %vm289_vm7 = vcmp.eq.f32.partialorder %v284_v13, 0.0 }
 0x157   :  { %v435_v17 = vadd.f32 %v434_v16, %v433_v15 }
 0x159   :  { %2743 = vrsqrt.f32 %v435_v17  ;;  %vm438_vm8 = vcmp.eq.f32.partialorder %v435_v17, inf  ;;  %vm440_vm9 = vcmp.eq.f32.partialorder %v435_v17, 0.0  ;;  %v441_v41 = vand.u32 2147483648, %v435_v17 }
 0x15e   :  { %v579_v18 = vpop.f32.mrf.mxu1 }
 0x15f   :  { %v584_v19 = vmul.f32 %v579_v18, %v579_v18 }
 0x160   :  { %v581_v20 = vpop.f32.mrf.mxu1 }
 0x161   :  { %v585_v21 = vmul.f32 %v581_v20, %v581_v20 }
 0x162   :  { %v2742_v22 = vpop.eup %2741 }
 0x163   :  { %v286_v23 = vmul.f32 %v2742_v22, %v284_v13  ;;  %v3308_v24 = vadd.f32 %v585_v21, %v584_v19  ;;  %v730_v25 = vpop.f32.mrf.mxu0 }
 0x164   :  { %v735_v27 = vmul.f32 %v730_v25, %v730_v25 }
 0x165   :  { %v288_v28 = vsel %vm287_vm6, %v284_v13, %v286_v23  ;;  %2745 = vrsqrt.f32 %v3308_v24  ;;  %v732_v29 = vpop.f32.mrf.mxu0  ;;  %vm589_vm10 = vcmp.eq.f32.partialorder %v3308_v24, inf  ;;  %v592_v6 = vand.u32 2147483648, %v3308_v24 }
 0x166   :  { %v291_v30 = vsel %vm289_vm7, %v290_v26, %v288_v28  ;;  %v736_v31 = vmul.f32 %v732_v29, %v732_v29  ;;  %v2744_v32 = vpop.eup %2743  ;;  %vm591_vm11 = vcmp.eq.f32.partialorder %v3308_v24, 0.0 }
 0x167   :  { %v293_v33 = vcombine.high %v291_v30, %v291_v30  ;;  %v300_v34 = vrot.slane %v291_v30, %v3261_v56  ;;  %v437_v35 = vmul.f32 %v2744_v32, %v435_v17 }
 0x168   :  { %v3312_v36 = vadd.f32 %v736_v31, %v735_v27 }
 0x169   :  { %v307_v37 = vrot.slane %v293_v33, %v3261_v56  ;;  %v308_v38 = vcombine.high %v300_v34, %v300_v34  ;;  %v316_v39 = vrot.slane %v300_v34, %v3261_v56  ;;  %2648 = vst.sshfl [vmem:[%s3902_s2 + $0x1] sm:$0x1 pattern:$0x73625140] %v300_v34  ;;  %v439_v40 = vsel %vm438_vm8, %v435_v17, %v437_v35 }
 0x16a   :  { %2747 = vrsqrt.f32 %v3312_v36  ;;  %v442_v46 = vsel %vm440_vm9, %v441_v41, %v439_v40  ;;  %vm740_vm12 = vcmp.eq.f32.partialorder %v3312_v36, inf  ;;  %vm742_vm13 = vcmp.eq.f32.partialorder %v3312_v36, 0.0 }
 0x16b   :  { %v309_v42 = vcombine.high %v307_v37, %v307_v37  ;;  %v323_v43 = vrot.slane %v307_v37, %v3261_v56  ;;  %v330_v44 = vrot.slane %v308_v38, %v3261_v56  ;;  %v338_v45 = vcombine.high %v316_v39, %v316_v39  ;;  %2649 = vst.sshfl [vmem:[%s3902_s2 + $0x19] sm:$0x1 pattern:$0x73625140] %v308_v38 }
 0x16c   :  { %2650 = vst.sshfl [vmem:[%s3902_s2 + $0x61] sm:$0x1 pattern:$0x73625140] %v307_v37  ;;  %v444_v50 = vcombine.high %v442_v46, %v442_v46  ;;  %v451_v51 = vrot.slane %v442_v46, %v3261_v56  ;;  %v743_v23 = vand.u32 2147483648, %v3312_v36 }
 0x16d   :  { %v337_v47 = vrot.slane %v309_v42, %v3261_v56  ;;  %v339_v48 = vcombine.high %v323_v43, %v323_v43  ;;  %v340_v49 = vcombine.high %v330_v44, %v330_v44  ;;  %352 = vst [vmem:[%s3902_s2 + $0x31] sm:$0x1] %v338_v45  ;;  %2651 = vst.sshfl [vmem:[%s3902_s2 + $0x79] sm:$0x1 pattern:$0x73625140] %v309_v42 }
 0x16e   :  { %v458_v53 = vrot.slane %v444_v50, %v3261_v56  ;;  %v459_v54 = vcombine.high %v451_v51, %v451_v51  ;;  %v467_v55 = vrot.slane %v451_v51, %v3261_v56  ;;  %2653 = vst.sshfl [vmem:[%s3902_s2 + $0x2] sm:$0x1 pattern:$0x73625140] %v451_v51 }
 0x16f   :  { %v341_v52 = vcombine.high %v337_v47, %v337_v47  ;;  %353 = vst [vmem:[%s3902_s2 + $0x49] sm:$0x1] %v340_v49  ;;  %356 = vst [vmem:[%s3902_s2 + $0x91] sm:$0x1] %v339_v48 }
 0x170   :  { %v886_v57 = vpop.f32.mrf.mxu1  ;;  %v460_v58 = vcombine.high %v458_v53, %v458_v53  ;;  %v474_v59 = vrot.slane %v458_v53, %v3261_v56  ;;  %2655 = vst.sshfl [vmem:[%s3902_s2 + $0x62] sm:$0x1 pattern:$0x73625140] %v458_v53  ;;  %v481_v62 = vrot.slane %v459_v54, %v3261_v56  ;;  %v489_v63 = vcombine.high %v467_v55, %v467_v55 }
 0x171   :  { %357 = vst [vmem:[%s3902_s2 + $0xa9] sm:$0x1] %v341_v52  ;;  %v891_v60 = vmul.f32 %v886_v57, %v886_v57  ;;  %2654 = vst.sshfl [vmem:[%s3902_s2 + $0x1a] sm:$0x1 pattern:$0x73625140] %v459_v54 }
 0x172   :  { %v2746_v61 = vpop.eup %2745  ;;  %v888_v1 = vpop.f32.mrf.mxu1  ;;  %v488_v2 = vrot.slane %v460_v58, %v3261_v56  ;;  %v490_v0 = vcombine.high %v474_v59, %v474_v59  ;;  %2656 = vst.sshfl [vmem:[%s3902_s2 + $0x7a] sm:$0x1 pattern:$0x73625140] %v460_v58  ;;  %v491_v5 = vcombine.high %v481_v62, %v481_v62  ;;  %503 = vst [vmem:[%s3902_s2 + $0x32] sm:$0x1] %v489_v63 }
 0x173   :  { %v588_v3 = vmul.f32 %v2746_v61, %v3308_v24  ;;  %v892_v4 = vmul.f32 %v888_v1, %v888_v1 }
 0x174   :  { %v492_v7 = vcombine.high %v488_v2, %v488_v2  ;;  %507 = vst [vmem:[%s3902_s2 + $0x92] sm:$0x1] %v490_v0  ;;  %504 = vst [vmem:[%s3902_s2 + $0x4a] sm:$0x1] %v491_v5 }
 0x175   :  { %v590_v8 = vsel %vm589_vm10, %v3308_v24, %v588_v3  ;;  %v3373_v9 = vadd.f32 %v892_v4, %v891_v60  ;;  %v1041_v10 = vpop.f32.mrf.mxu0 }
 0x176   :  { %v593_v11 = vsel %vm591_vm11, %v592_v6, %v590_v8  ;;  %v1046_v12 = vmul.f32 %v1041_v10, %v1041_v10  ;;  %508 = vst [vmem:[%s3902_s2 + $0xaa] sm:$0x1] %v492_v7 }
 0x177   :  { %v2748_v13 = vpop.eup %2747  ;;  %v595_v14 = vcombine.high %v593_v11, %v593_v11  ;;  %v602_v15 = vrot.slane %v593_v11, %v3261_v56  ;;  %2749 = vrsqrt.f32 %v3373_v9  ;;  %v1043_v16 = vpop.f32.mrf.mxu0  ;;  %vm896_vm14 = vcmp.eq.f32.partialorder %v3373_v9, inf }
 0x178   :  { %v739_v17 = vmul.f32 %v2748_v13, %v3312_v36  ;;  %v1047_v18 = vmul.f32 %v1043_v16, %v1043_v16  ;;  %v899_v53 = vand.u32 2147483648, %v3373_v9  ;;  %vm898_vm15 = vcmp.eq.f32.partialorder %v3373_v9, 0.0 }
 0x179   :  { %v609_v19 = vrot.slane %v595_v14, %v3261_v56  ;;  %v610_v20 = vcombine.high %v602_v15, %v602_v15  ;;  %v618_v21 = vrot.slane %v602_v15, %v3261_v56  ;;  %2658 = vst.sshfl [vmem:[%s3902_s2 + $0x3] sm:$0x1 pattern:$0x73625140] %v602_v15 }
 0x17a   :  { %v741_v22 = vsel %vm740_vm12, %v3312_v36, %v739_v17  ;;  %v3393_v24 = vadd.f32 %v1047_v18, %v1046_v12 }
 0x17b   :  { %v611_v25 = vcombine.high %v609_v19, %v609_v19  ;;  %v625_v26 = vrot.slane %v609_v19, %v3261_v56  ;;  %v632_v27 = vrot.slane %v610_v20, %v3261_v56  ;;  %v640_v28 = vcombine.high %v618_v21, %v618_v21  ;;  %2659 = vst.sshfl [vmem:[%s3902_s2 + $0x1b] sm:$0x1 pattern:$0x73625140] %v610_v20 }
 0x17c   :  { %2660 = vst.sshfl [vmem:[%s3902_s2 + $0x63] sm:$0x1 pattern:$0x73625140] %v609_v19  ;;  %v744_v29 = vsel %vm742_vm13, %v743_v23, %v741_v22  ;;  %2751 = vrsqrt.f32 %v3393_v24  ;;  %vm1051_vm0 = vcmp.eq.f32.partialorder %v3393_v24, inf  ;;  %vm1053_vm1 = vcmp.eq.f32.partialorder %v3393_v24, 0.0 }
 0x17d   :  { %v639_v30 = vrot.slane %v611_v25, %v3261_v56  ;;  %v641_v31 = vcombine.high %v625_v26, %v625_v26  ;;  %v642_v32 = vcombine.high %v632_v27, %v632_v27  ;;  %654 = vst [vmem:[%s3902_s2 + $0x33] sm:$0x1] %v640_v28  ;;  %2661 = vst.sshfl [vmem:[%s3902_s2 + $0x7b] sm:$0x1 pattern:$0x73625140] %v611_v25 }
 0x17e   :  { %v746_v33 = vcombine.high %v744_v29, %v744_v29  ;;  %v753_v34 = vrot.slane %v744_v29, %v3261_v56  ;;  %v1054_v6 = vand.u32 2147483648, %v3393_v24 }
 0x17f   :  { %v643_v35 = vcombine.high %v639_v30, %v639_v30  ;;  %655 = vst [vmem:[%s3902_s2 + $0x4b] sm:$0x1] %v642_v32  ;;  %658 = vst [vmem:[%s3902_s2 + $0x93] sm:$0x1] %v641_v31 }
 0x180   :  { %v760_v36 = vrot.slane %v746_v33, %v3261_v56  ;;  %v761_v37 = vcombine.high %v753_v34, %v753_v34  ;;  %v769_v38 = vrot.slane %v753_v34, %v3261_v56  ;;  %2663 = vst.sshfl [vmem:[%s3902_s2 + $0x4] sm:$0x1 pattern:$0x73625140] %v753_v34 }
 0x181   :  { %659 = vst [vmem:[%s3902_s2 + $0xab] sm:$0x1] %v643_v35 }
 0x182   :  { %v762_v39 = vcombine.high %v760_v36, %v760_v36  ;;  %v776_v40 = vrot.slane %v760_v36, %v3261_v56  ;;  %2665 = vst.sshfl [vmem:[%s3902_s2 + $0x64] sm:$0x1 pattern:$0x73625140] %v760_v36  ;;  %v783_v41 = vrot.slane %v761_v37, %v3261_v56  ;;  %v791_v42 = vcombine.high %v769_v38, %v769_v38  ;;  %v1196_v43 = vpop.f32.mrf.mxu1 }
 0x183   :  { %2664 = vst.sshfl [vmem:[%s3902_s2 + $0x1c] sm:$0x1 pattern:$0x73625140] %v761_v37  ;;  %v1201_v46 = vmul.f32 %v1196_v43, %v1196_v43 }
 0x184   :  { %v790_v44 = vrot.slane %v762_v39, %v3261_v56  ;;  %v792_v45 = vcombine.high %v776_v40, %v776_v40  ;;  %2666 = vst.sshfl [vmem:[%s3902_s2 + $0x7c] sm:$0x1 pattern:$0x73625140] %v762_v39  ;;  %v2750_v47 = vpop.eup %2749  ;;  %v793_v48 = vcombine.high %v783_v41, %v783_v41  ;;  %805 = vst [vmem:[%s3902_s2 + $0x34] sm:$0x1] %v791_v42  ;;  %v1198_v49 = vpop.f32.mrf.mxu1 }
 0x185   :  { %v895_v51 = vmul.f32 %v2750_v47, %v3373_v9  ;;  %v1202_v52 = vmul.f32 %v1198_v49, %v1198_v49 }
 0x186   :  { %v794_v50 = vcombine.high %v790_v44, %v790_v44  ;;  %809 = vst [vmem:[%s3902_s2 + $0x94] sm:$0x1] %v792_v45  ;;  %806 = vst [vmem:[%s3902_s2 + $0x4c] sm:$0x1] %v793_v48 }
 0x187   :  { %v897_v54 = vsel %vm896_vm14, %v3373_v9, %v895_v51  ;;  %v3455_v55 = vadd.f32 %v1202_v52, %v1201_v46  ;;  %v1345_v57 = vpop.f32.mrf.mxu0 }
 0x188   :  { %810 = vst [vmem:[%s3902_s2 + $0xac] sm:$0x1] %v794_v50  ;;  %v900_v58 = vsel %vm898_vm15, %v899_v53, %v897_v54  ;;  %v1350_v59 = vmul.f32 %v1345_v57, %v1345_v57 }
 0x189   :  { %v2752_v60 = vpop.eup %2751  ;;  %v902_v61 = vcombine.high %v900_v58, %v900_v58  ;;  %v909_v62 = vrot.slane %v900_v58, %v3261_v56  ;;  %2753 = vrsqrt.f32 %v3455_v55  ;;  %v1347_v63 = vpop.f32.mrf.mxu0  ;;  %vm1206_vm2 = vcmp.eq.f32.partialorder %v3455_v55, inf }
 0x18a   :  { %v1050_v1 = vmul.f32 %v2752_v60, %v3393_v24  ;;  %v1351_v2 = vmul.f32 %v1347_v63, %v1347_v63  ;;  %v1209_v36 = vand.u32 2147483648, %v3455_v55  ;;  %vm1208_vm3 = vcmp.eq.f32.partialorder %v3455_v55, 0.0 }
 0x18b   :  { %v916_v0 = vrot.slane %v902_v61, %v3261_v56  ;;  %v917_v3 = vcombine.high %v909_v62, %v909_v62  ;;  %v925_v4 = vrot.slane %v909_v62, %v3261_v56  ;;  %2668 = vst.sshfl [vmem:[%s3902_s2 + $0x5] sm:$0x1 pattern:$0x73625140] %v909_v62 }
 0x18c   :  { %v1052_v5 = vsel %vm1051_vm0, %v3393_v24, %v1050_v1  ;;  %v3469_v7 = vadd.f32 %v1351_v2, %v1350_v59 }
 0x18d   :  { %v918_v8 = vcombine.high %v916_v0, %v916_v0  ;;  %v932_v9 = vrot.slane %v916_v0, %v3261_v56  ;;  %v939_v10 = vrot.slane %v917_v3, %v3261_v56  ;;  %v947_v11 = vcombine.high %v925_v4, %v925_v4  ;;  %2669 = vst.sshfl [vmem:[%s3902_s2 + $0x1d] sm:$0x1 pattern:$0x73625140] %v917_v3 }
 0x18e   :  { %2670 = vst.sshfl [vmem:[%s3902_s2 + $0x65] sm:$0x1 pattern:$0x73625140] %v916_v0  ;;  %v1055_v12 = vsel %vm1053_vm1, %v1054_v6, %v1052_v5  ;;  %2755 = vrsqrt.f32 %v3469_v7  ;;  %vm1355_vm4 = vcmp.eq.f32.partialorder %v3469_v7, inf  ;;  %vm1357_vm5 = vcmp.eq.f32.partialorder %v3469_v7, 0.0 }
 0x18f   :  { %v946_v13 = vrot.slane %v918_v8, %v3261_v56  ;;  %v948_v14 = vcombine.high %v932_v9, %v932_v9  ;;  %v949_v15 = vcombine.high %v939_v10, %v939_v10  ;;  %961 = vst [vmem:[%s3902_s2 + $0x35] sm:$0x1] %v947_v11  ;;  %2671 = vst.sshfl [vmem:[%s3902_s2 + $0x7d] sm:$0x1 pattern:$0x73625140] %v918_v8 }
 0x190   :  { %v1057_v16 = vcombine.high %v1055_v12, %v1055_v12  ;;  %v1064_v17 = vrot.slane %v1055_v12, %v3261_v56  ;;  %v1358_v52 = vand.u32 2147483648, %v3469_v7 }
 0x191   :  { %v950_v18 = vcombine.high %v946_v13, %v946_v13  ;;  %962 = vst [vmem:[%s3902_s2 + $0x4d] sm:$0x1] %v949_v15  ;;  %965 = vst [vmem:[%s3902_s2 + $0x95] sm:$0x1] %v948_v14 }
 0x192   :  { %v1071_v19 = vrot.slane %v1057_v16, %v3261_v56  ;;  %v1072_v20 = vcombine.high %v1064_v17, %v1064_v17  ;;  %v1080_v21 = vrot.slane %v1064_v17, %v3261_v56  ;;  %2673 = vst.sshfl [vmem:[%s3902_s2 + $0x6] sm:$0x1 pattern:$0x73625140] %v1064_v17 }
 0x193   :  { %966 = vst [vmem:[%s3902_s2 + $0xad] sm:$0x1] %v950_v18 }
 0x194   :  { %v1073_v22 = vcombine.high %v1071_v19, %v1071_v19  ;;  %v1087_v23 = vrot.slane %v1071_v19, %v3261_v56  ;;  %2675 = vst.sshfl [vmem:[%s3902_s2 + $0x66] sm:$0x1 pattern:$0x73625140] %v1071_v19  ;;  %v1094_v24 = vrot.slane %v1072_v20, %v3261_v56  ;;  %v1102_v25 = vcombine.high %v1080_v21, %v1080_v21  ;;  %v1496_v26 = vpop.f32.mrf.mxu1 }
 0x195   :  { %2674 = vst.sshfl [vmem:[%s3902_s2 + $0x1e] sm:$0x1 pattern:$0x73625140] %v1072_v20  ;;  %v1501_v29 = vmul.f32 %v1496_v26, %v1496_v26 }
 0x196   :  { %v1101_v27 = vrot.slane %v1073_v22, %v3261_v56  ;;  %v1103_v28 = vcombine.high %v1087_v23, %v1087_v23  ;;  %2676 = vst.sshfl [vmem:[%s3902_s2 + $0x7e] sm:$0x1 pattern:$0x73625140] %v1073_v22  ;;  %v2754_v30 = vpop.eup %2753  ;;  %v1104_v31 = vcombine.high %v1094_v24, %v1094_v24  ;;  %1116 = vst [vmem:[%s3902_s2 + $0x36] sm:$0x1] %v1102_v25  ;;  %v1498_v32 = vpop.f32.mrf.mxu1 }
 0x197   :  { %v1205_v34 = vmul.f32 %v2754_v30, %v3455_v55  ;;  %v1502_v35 = vmul.f32 %v1498_v32, %v1498_v32 }
 0x198   :  { %v1105_v33 = vcombine.high %v1101_v27, %v1101_v27  ;;  %1120 = vst [vmem:[%s3902_s2 + $0x96] sm:$0x1] %v1103_v28  ;;  %1117 = vst [vmem:[%s3902_s2 + $0x4e] sm:$0x1] %v1104_v31 }
 0x199   :  { %v1207_v37 = vsel %vm1206_vm2, %v3455_v55, %v1205_v34  ;;  %v3531_v38 = vadd.f32 %v1502_v35, %v1501_v29  ;;  %v1647_v39 = vpop.f32.mrf.mxu0 }
 0x19a   :  { %1121 = vst [vmem:[%s3902_s2 + $0xae] sm:$0x1] %v1105_v33  ;;  %v1210_v40 = vsel %vm1208_vm3, %v1209_v36, %v1207_v37  ;;  %v1652_v41 = vmul.f32 %v1647_v39, %v1647_v39 }
 0x19b   :  { %v2756_v42 = vpop.eup %2755  ;;  %v1212_v43 = vcombine.high %v1210_v40, %v1210_v40  ;;  %v1219_v44 = vrot.slane %v1210_v40, %v3261_v56  ;;  %2757 = vrsqrt.f32 %v3531_v38  ;;  %v1649_v45 = vpop.f32.mrf.mxu0  ;;  %vm1506_vm6 = vcmp.eq.f32.partialorder %v3531_v38, inf }
 0x19c   :  { %v1354_v46 = vmul.f32 %v2756_v42, %v3469_v7  ;;  %v1653_v47 = vmul.f32 %v1649_v45, %v1649_v45  ;;  %v1509_v19 = vand.u32 2147483648, %v3531_v38  ;;  %vm1508_vm7 = vcmp.eq.f32.partialorder %v3531_v38, 0.0 }
 0x19d   :  { %v1226_v48 = vrot.slane %v1212_v43, %v3261_v56  ;;  %v1227_v49 = vcombine.high %v1219_v44, %v1219_v44  ;;  %v1235_v50 = vrot.slane %v1219_v44, %v3261_v56  ;;  %2678 = vst.sshfl [vmem:[%s3902_s2 + $0x7] sm:$0x1 pattern:$0x73625140] %v1219_v44 }
 0x19e   :  { %v1356_v51 = vsel %vm1355_vm4, %v3469_v7, %v1354_v46  ;;  %v3545_v53 = vadd.f32 %v1653_v47, %v1652_v41 }
 0x19f   :  { %v1228_v54 = vcombine.high %v1226_v48, %v1226_v48  ;;  %v1242_v55 = vrot.slane %v1226_v48, %v3261_v56  ;;  %v1249_v57 = vrot.slane %v1227_v49, %v3261_v56  ;;  %v1257_v58 = vcombine.high %v1235_v50, %v1235_v50  ;;  %2679 = vst.sshfl [vmem:[%s3902_s2 + $0x1f] sm:$0x1 pattern:$0x73625140] %v1227_v49 }
 0x1a0   :  { %2680 = vst.sshfl [vmem:[%s3902_s2 + $0x67] sm:$0x1 pattern:$0x73625140] %v1226_v48  ;;  %v1359_v59 = vsel %vm1357_vm5, %v1358_v52, %v1356_v51  ;;  %2759 = vrsqrt.f32 %v3545_v53  ;;  %vm1657_vm8 = vcmp.eq.f32.partialorder %v3545_v53, inf  ;;  %vm1659_vm9 = vcmp.eq.f32.partialorder %v3545_v53, 0.0 }
 0x1a1   :  { %v1256_v60 = vrot.slane %v1228_v54, %v3261_v56  ;;  %v1258_v61 = vcombine.high %v1242_v55, %v1242_v55  ;;  %v1259_v62 = vcombine.high %v1249_v57, %v1249_v57  ;;  %1271 = vst [vmem:[%s3902_s2 + $0x37] sm:$0x1] %v1257_v58  ;;  %2681 = vst.sshfl [vmem:[%s3902_s2 + $0x7f] sm:$0x1 pattern:$0x73625140] %v1228_v54 }
 0x1a2   :  { %v1361_v63 = vcombine.high %v1359_v59, %v1359_v59  ;;  %v1368_v1 = vrot.slane %v1359_v59, %v3261_v56  ;;  %v1660_v35 = vand.u32 2147483648, %v3545_v53 }
 0x1a3   :  { %v1260_v2 = vcombine.high %v1256_v60, %v1256_v60  ;;  %1272 = vst [vmem:[%s3902_s2 + $0x4f] sm:$0x1] %v1259_v62  ;;  %1275 = vst [vmem:[%s3902_s2 + $0x97] sm:$0x1] %v1258_v61 }
 0x1a4   :  { %v1375_v0 = vrot.slane %v1361_v63, %v3261_v56  ;;  %v1376_v3 = vcombine.high %v1368_v1, %v1368_v1  ;;  %v1384_v4 = vrot.slane %v1368_v1, %v3261_v56  ;;  %2683 = vst.sshfl [vmem:[%s3902_s2 + $0x8] sm:$0x1 pattern:$0x73625140] %v1368_v1 }
 0x1a5   :  { %1276 = vst [vmem:[%s3902_s2 + $0xaf] sm:$0x1] %v1260_v2 }
 0x1a6   :  { %v1377_v5 = vcombine.high %v1375_v0, %v1375_v0  ;;  %v1391_v6 = vrot.slane %v1375_v0, %v3261_v56  ;;  %2685 = vst.sshfl [vmem:[%s3902_s2 + $0x68] sm:$0x1 pattern:$0x73625140] %v1375_v0  ;;  %v1398_v7 = vrot.slane %v1376_v3, %v3261_v56  ;;  %v1406_v8 = vcombine.high %v1384_v4, %v1384_v4  ;;  %v1798_v9 = vpop.f32.mrf.mxu1 }
 0x1a7   :  { %2684 = vst.sshfl [vmem:[%s3902_s2 + $0x20] sm:$0x1 pattern:$0x73625140] %v1376_v3  ;;  %v1803_v12 = vmul.f32 %v1798_v9, %v1798_v9 }
 0x1a8   :  { %v1405_v10 = vrot.slane %v1377_v5, %v3261_v56  ;;  %v1407_v11 = vcombine.high %v1391_v6, %v1391_v6  ;;  %2686 = vst.sshfl [vmem:[%s3902_s2 + $0x80] sm:$0x1 pattern:$0x73625140] %v1377_v5  ;;  %v2758_v13 = vpop.eup %2757  ;;  %v1408_v14 = vcombine.high %v1398_v7, %v1398_v7  ;;  %1420 = vst [vmem:[%s3902_s2 + $0x38] sm:$0x1] %v1406_v8  ;;  %v1800_v15 = vpop.f32.mrf.mxu1 }
 0x1a9   :  { %v1505_v17 = vmul.f32 %v2758_v13, %v3531_v38  ;;  %v1804_v18 = vmul.f32 %v1800_v15, %v1800_v15 }
 0x1aa   :  { %v1409_v16 = vcombine.high %v1405_v10, %v1405_v10  ;;  %1424 = vst [vmem:[%s3902_s2 + $0x98] sm:$0x1] %v1407_v11  ;;  %1421 = vst [vmem:[%s3902_s2 + $0x50] sm:$0x1] %v1408_v14 }
 0x1ab   :  { %v1507_v20 = vsel %vm1506_vm6, %v3531_v38, %v1505_v17  ;;  %v3607_v21 = vadd.f32 %v1804_v18, %v1803_v12  ;;  %v1949_v22 = vpop.f32.mrf.mxu0 }
 0x1ac   :  { %1425 = vst [vmem:[%s3902_s2 + $0xb0] sm:$0x1] %v1409_v16  ;;  %v1510_v23 = vsel %vm1508_vm7, %v1509_v19, %v1507_v20  ;;  %v1954_v24 = vmul.f32 %v1949_v22, %v1949_v22 }
 0x1ad   :  { %v2760_v25 = vpop.eup %2759  ;;  %v1512_v26 = vcombine.high %v1510_v23, %v1510_v23  ;;  %v1519_v27 = vrot.slane %v1510_v23, %v3261_v56  ;;  %2761 = vrsqrt.f32 %v3607_v21  ;;  %v1951_v28 = vpop.f32.mrf.mxu0  ;;  %vm1808_vm10 = vcmp.eq.f32.partialorder %v3607_v21, inf }
 0x1ae   :  { %v1656_v29 = vmul.f32 %v2760_v25, %v3545_v53  ;;  %v1955_v30 = vmul.f32 %v1951_v28, %v1951_v28  ;;  %v1811_v0 = vand.u32 2147483648, %v3607_v21  ;;  %vm1810_vm11 = vcmp.eq.f32.partialorder %v3607_v21, 0.0 }
 0x1af   :  { %v1526_v31 = vrot.slane %v1512_v26, %v3261_v56  ;;  %v1527_v32 = vcombine.high %v1519_v27, %v1519_v27  ;;  %v1535_v33 = vrot.slane %v1519_v27, %v3261_v56  ;;  %2688 = vst.sshfl [vmem:[%s3902_s2 + $0x9] sm:$0x1 pattern:$0x73625140] %v1519_v27 }
 0x1b0   :  { %v1658_v34 = vsel %vm1657_vm8, %v3545_v53, %v1656_v29  ;;  %v3621_v36 = vadd.f32 %v1955_v30, %v1954_v24 }
 0x1b1   :  { %v1528_v37 = vcombine.high %v1526_v31, %v1526_v31  ;;  %v1542_v38 = vrot.slane %v1526_v31, %v3261_v56  ;;  %v1549_v39 = vrot.slane %v1527_v32, %v3261_v56  ;;  %v1557_v40 = vcombine.high %v1535_v33, %v1535_v33  ;;  %2689 = vst.sshfl [vmem:[%s3902_s2 + $0x21] sm:$0x1 pattern:$0x73625140] %v1527_v32 }
 0x1b2   :  { %2690 = vst.sshfl [vmem:[%s3902_s2 + $0x69] sm:$0x1 pattern:$0x73625140] %v1526_v31  ;;  %v1661_v41 = vsel %vm1659_vm9, %v1660_v35, %v1658_v34  ;;  %2763 = vrsqrt.f32 %v3621_v36  ;;  %vm1959_vm12 = vcmp.eq.f32.partialorder %v3621_v36, inf  ;;  %vm1961_vm13 = vcmp.eq.f32.partialorder %v3621_v36, 0.0 }
 0x1b3   :  { %v1556_v42 = vrot.slane %v1528_v37, %v3261_v56  ;;  %v1558_v43 = vcombine.high %v1542_v38, %v1542_v38  ;;  %v1559_v44 = vcombine.high %v1549_v39, %v1549_v39  ;;  %1571 = vst [vmem:[%s3902_s2 + $0x39] sm:$0x1] %v1557_v40  ;;  %2691 = vst.sshfl [vmem:[%s3902_s2 + $0x81] sm:$0x1 pattern:$0x73625140] %v1528_v37 }
 0x1b4   :  { %v1663_v45 = vcombine.high %v1661_v41, %v1661_v41  ;;  %v1670_v46 = vrot.slane %v1661_v41, %v3261_v56  ;;  %v1962_v18 = vand.u32 2147483648, %v3621_v36 }
 0x1b5   :  { %v1560_v47 = vcombine.high %v1556_v42, %v1556_v42  ;;  %1572 = vst [vmem:[%s3902_s2 + $0x51] sm:$0x1] %v1559_v44  ;;  %1575 = vst [vmem:[%s3902_s2 + $0x99] sm:$0x1] %v1558_v43 }
 0x1b6   :  { %v1677_v48 = vrot.slane %v1663_v45, %v3261_v56  ;;  %v1678_v49 = vcombine.high %v1670_v46, %v1670_v46  ;;  %v1686_v50 = vrot.slane %v1670_v46, %v3261_v56  ;;  %2693 = vst.sshfl [vmem:[%s3902_s2 + $0xa] sm:$0x1 pattern:$0x73625140] %v1670_v46 }
 0x1b7   :  { %1576 = vst [vmem:[%s3902_s2 + $0xb1] sm:$0x1] %v1560_v47 }
 0x1b8   :  { %v1679_v51 = vcombine.high %v1677_v48, %v1677_v48  ;;  %v1693_v52 = vrot.slane %v1677_v48, %v3261_v56  ;;  %2695 = vst.sshfl [vmem:[%s3902_s2 + $0x6a] sm:$0x1 pattern:$0x73625140] %v1677_v48  ;;  %v1700_v53 = vrot.slane %v1678_v49, %v3261_v56  ;;  %v1708_v54 = vcombine.high %v1686_v50, %v1686_v50  ;;  %v2102_v55 = vpop.f32.mrf.mxu1 }
 0x1b9   :  { %2694 = vst.sshfl [vmem:[%s3902_s2 + $0x22] sm:$0x1 pattern:$0x73625140] %v1678_v49  ;;  %v2107_v1 = vmul.f32 %v2102_v55, %v2102_v55 }
 0x1ba   :  { %v1707_v57 = vrot.slane %v1679_v51, %v3261_v56  ;;  %v1709_v58 = vcombine.high %v1693_v52, %v1693_v52  ;;  %2696 = vst.sshfl [vmem:[%s3902_s2 + $0x82] sm:$0x1 pattern:$0x73625140] %v1679_v51  ;;  %v2762_v59 = vpop.eup %2761  ;;  %v1710_v60 = vcombine.high %v1700_v53, %v1700_v53  ;;  %1722 = vst [vmem:[%s3902_s2 + $0x3a] sm:$0x1] %v1708_v54  ;;  %v2104_v61 = vpop.f32.mrf.mxu1 }
 0x1bb   :  { %v1807_v63 = vmul.f32 %v2762_v59, %v3607_v21  ;;  %v2108_v2 = vmul.f32 %v2104_v61, %v2104_v61 }
 0x1bc   :  { %v1711_v62 = vcombine.high %v1707_v57, %v1707_v57  ;;  %1726 = vst [vmem:[%s3902_s2 + $0x9a] sm:$0x1] %v1709_v58  ;;  %1723 = vst [vmem:[%s3902_s2 + $0x52] sm:$0x1] %v1710_v60 }
 0x1bd   :  { %v1809_v3 = vsel %vm1808_vm10, %v3607_v21, %v1807_v63  ;;  %v3683_v4 = vadd.f32 %v2108_v2, %v2107_v1  ;;  %v2254_v5 = vpop.f32.mrf.mxu0 }
 0x1be   :  { %1727 = vst [vmem:[%s3902_s2 + $0xb2] sm:$0x1] %v1711_v62  ;;  %v1812_v6 = vsel %vm1810_vm11, %v1811_v0, %v1809_v3  ;;  %v2259_v12 = vmul.f32 %v2254_v5, %v2254_v5 }
 0x1bf   :  { %v2764_v7 = vpop.eup %2763  ;;  %v1814_v8 = vcombine.high %v1812_v6, %v1812_v6  ;;  %v1821_v9 = vrot.slane %v1812_v6, %v3261_v56  ;;  %2765 = vrsqrt.f32 %v3683_v4  ;;  %v2256_v10 = vpop.f32.mrf.mxu0  ;;  %vm2112_vm14 = vcmp.eq.f32.partialorder %v3683_v4, inf }
 0x1c0   :  { %v1958_v11 = vmul.f32 %v2764_v7, %v3621_v36  ;;  %v2260_v13 = vmul.f32 %v2256_v10, %v2256_v10  ;;  %v2115_v48 = vand.u32 2147483648, %v3683_v4  ;;  %vm2114_vm15 = vcmp.eq.f32.partialorder %v3683_v4, 0.0 }
 0x1c1   :  { %v1828_v14 = vrot.slane %v1814_v8, %v3261_v56  ;;  %v1829_v15 = vcombine.high %v1821_v9, %v1821_v9  ;;  %v1837_v16 = vrot.slane %v1821_v9, %v3261_v56  ;;  %2698 = vst.sshfl [vmem:[%s3902_s2 + $0xb] sm:$0x1 pattern:$0x73625140] %v1821_v9 }
 0x1c2   :  { %v1960_v17 = vsel %vm1959_vm12, %v3621_v36, %v1958_v11  ;;  %v3697_v19 = vadd.f32 %v2260_v13, %v2259_v12 }
 0x1c3   :  { %v1830_v20 = vcombine.high %v1828_v14, %v1828_v14  ;;  %v1844_v21 = vrot.slane %v1828_v14, %v3261_v56  ;;  %v1851_v22 = vrot.slane %v1829_v15, %v3261_v56  ;;  %v1859_v23 = vcombine.high %v1837_v16, %v1837_v16  ;;  %2699 = vst.sshfl [vmem:[%s3902_s2 + $0x23] sm:$0x1 pattern:$0x73625140] %v1829_v15 }
 0x1c4   :  { %2700 = vst.sshfl [vmem:[%s3902_s2 + $0x6b] sm:$0x1 pattern:$0x73625140] %v1828_v14  ;;  %v1963_v24 = vsel %vm1961_vm13, %v1962_v18, %v1960_v17  ;;  %2767 = vrsqrt.f32 %v3697_v19  ;;  %vm2264_vm0 = vcmp.eq.f32.partialorder %v3697_v19, inf  ;;  %vm2266_vm1 = vcmp.eq.f32.partialorder %v3697_v19, 0.0 }
 0x1c5   :  { %v1858_v25 = vrot.slane %v1830_v20, %v3261_v56  ;;  %v1860_v26 = vcombine.high %v1844_v21, %v1844_v21  ;;  %v1861_v27 = vcombine.high %v1851_v22, %v1851_v22  ;;  %1873 = vst [vmem:[%s3902_s2 + $0x3b] sm:$0x1] %v1859_v23  ;;  %2701 = vst.sshfl [vmem:[%s3902_s2 + $0x83] sm:$0x1 pattern:$0x73625140] %v1830_v20 }
 0x1c6   :  { %v1965_v28 = vcombine.high %v1963_v24, %v1963_v24  ;;  %v1972_v29 = vrot.slane %v1963_v24, %v3261_v56  ;;  %v2267_v2 = vand.u32 2147483648, %v3697_v19 }
 0x1c7   :  { %v1862_v30 = vcombine.high %v1858_v25, %v1858_v25  ;;  %1874 = vst [vmem:[%s3902_s2 + $0x53] sm:$0x1] %v1861_v27  ;;  %1877 = vst [vmem:[%s3902_s2 + $0x9b] sm:$0x1] %v1860_v26 }
 0x1c8   :  { %v1979_v31 = vrot.slane %v1965_v28, %v3261_v56  ;;  %v1980_v32 = vcombine.high %v1972_v29, %v1972_v29  ;;  %v1988_v33 = vrot.slane %v1972_v29, %v3261_v56  ;;  %2703 = vst.sshfl [vmem:[%s3902_s2 + $0xc] sm:$0x1 pattern:$0x73625140] %v1972_v29 }
 0x1c9   :  { %1878 = vst [vmem:[%s3902_s2 + $0xb3] sm:$0x1] %v1862_v30 }
 0x1ca   :  { %v1981_v34 = vcombine.high %v1979_v31, %v1979_v31  ;;  %v1995_v35 = vrot.slane %v1979_v31, %v3261_v56  ;;  %2705 = vst.sshfl [vmem:[%s3902_s2 + $0x6c] sm:$0x1 pattern:$0x73625140] %v1979_v31  ;;  %v2002_v36 = vrot.slane %v1980_v32, %v3261_v56  ;;  %v2010_v37 = vcombine.high %v1988_v33, %v1988_v33  ;;  %v2406_v38 = vpop.f32.mrf.mxu1 }
 0x1cb   :  { %2704 = vst.sshfl [vmem:[%s3902_s2 + $0x24] sm:$0x1 pattern:$0x73625140] %v1980_v32  ;;  %v2411_v46 = vmul.f32 %v2406_v38, %v2406_v38 }
 0x1cc   :  { %v2009_v39 = vrot.slane %v1981_v34, %v3261_v56  ;;  %v2011_v40 = vcombine.high %v1995_v35, %v1995_v35  ;;  %2706 = vst.sshfl [vmem:[%s3902_s2 + $0x84] sm:$0x1 pattern:$0x73625140] %v1981_v34  ;;  %v2766_v41 = vpop.eup %2765  ;;  %v2012_v42 = vcombine.high %v2002_v36, %v2002_v36  ;;  %2024 = vst [vmem:[%s3902_s2 + $0x3c] sm:$0x1] %v2010_v37  ;;  %v2408_v43 = vpop.f32.mrf.mxu1 }
 0x1cd   :  { %v2111_v45 = vmul.f32 %v2766_v41, %v3683_v4  ;;  %v2412_v47 = vmul.f32 %v2408_v43, %v2408_v43 }
 0x1ce   :  { %v2013_v44 = vcombine.high %v2009_v39, %v2009_v39  ;;  %2028 = vst [vmem:[%s3902_s2 + $0x9c] sm:$0x1] %v2011_v40  ;;  %2025 = vst [vmem:[%s3902_s2 + $0x54] sm:$0x1] %v2012_v42  ;;  %v2555_v49 = vpop.f32.mrf.mxu0 }
 0x1cf   :  { %v2113_v50 = vsel %vm2112_vm14, %v3683_v4, %v2111_v45  ;;  %v3759_v51 = vadd.f32 %v2412_v47, %v2411_v46  ;;  %v2560_v59 = vmul.f32 %v2555_v49, %v2555_v49 }
 0x1d0   :  { %2029 = vst [vmem:[%s3902_s2 + $0xb4] sm:$0x1] %v2013_v44  ;;  %v2116_v52 = vsel %vm2114_vm15, %v2115_v48, %v2113_v50  ;;  %v2557_v53 = vpop.f32.mrf.mxu0 }
 0x1d1   :  { %v2768_v54 = vpop.eup %2767  ;;  %v2118_v55 = vcombine.high %v2116_v52, %v2116_v52  ;;  %v2125_v57 = vrot.slane %v2116_v52, %v3261_v56  ;;  %2769 = vrsqrt.f32 %v3759_v51  ;;  %v2561_v60 = vmul.f32 %v2557_v53, %v2557_v53 }
 0x1d2   :  { %v2263_v58 = vmul.f32 %v2768_v54, %v3697_v19  ;;  %vm2416_vm2 = vcmp.eq.f32.partialorder %v3759_v51, inf  ;;  %v2419_v27 = vand.u32 2147483648, %v3759_v51  ;;  %vm2418_vm3 = vcmp.eq.f32.partialorder %v3759_v51, 0.0 }
 0x1d3   :  { %v2132_v61 = vrot.slane %v2118_v55, %v3261_v56  ;;  %v2133_v62 = vcombine.high %v2125_v57, %v2125_v57  ;;  %v2141_v63 = vrot.slane %v2125_v57, %v3261_v56  ;;  %2708 = vst.sshfl [vmem:[%s3902_s2 + $0xd] sm:$0x1 pattern:$0x73625140] %v2125_v57  ;;  %v3773_v0 = vadd.f32 %v2561_v60, %v2560_v59 }
 0x1d4   :  { %v2265_v1 = vsel %vm2264_vm0, %v3697_v19, %v2263_v58 }
 0x1d5   :  { %v2134_v3 = vcombine.high %v2132_v61, %v2132_v61  ;;  %v2148_v4 = vrot.slane %v2132_v61, %v3261_v56  ;;  %v2155_v5 = vrot.slane %v2133_v62, %v3261_v56  ;;  %v2163_v6 = vcombine.high %v2141_v63, %v2141_v63  ;;  %2709 = vst.sshfl [vmem:[%s3902_s2 + $0x25] sm:$0x1 pattern:$0x73625140] %v2133_v62 }
 0x1d6   :  { %2710 = vst.sshfl [vmem:[%s3902_s2 + $0x6d] sm:$0x1 pattern:$0x73625140] %v2132_v61  ;;  %v2268_v7 = vsel %vm2266_vm1, %v2267_v2, %v2265_v1  ;;  %2771 = vrsqrt.f32 %v3773_v0  ;;  %vm2565_vm4 = vcmp.eq.f32.partialorder %v3773_v0, inf  ;;  %vm2567_vm5 = vcmp.eq.f32.partialorder %v3773_v0, 0.0 }
 0x1d7   :  { %v2162_v8 = vrot.slane %v2134_v3, %v3261_v56  ;;  %v2164_v9 = vcombine.high %v2148_v4, %v2148_v4  ;;  %v2165_v10 = vcombine.high %v2155_v5, %v2155_v5  ;;  %2177 = vst [vmem:[%s3902_s2 + $0x3d] sm:$0x1] %v2163_v6  ;;  %2711 = vst.sshfl [vmem:[%s3902_s2 + $0x85] sm:$0x1 pattern:$0x73625140] %v2134_v3 }
 0x1d8   :  { %v2270_v11 = vcombine.high %v2268_v7, %v2268_v7  ;;  %v2277_v12 = vrot.slane %v2268_v7, %v3261_v56  ;;  %v2568_v38 = vand.u32 2147483648, %v3773_v0 }
 0x1d9   :  { %v2166_v13 = vcombine.high %v2162_v8, %v2162_v8  ;;  %2178 = vst [vmem:[%s3902_s2 + $0x55] sm:$0x1] %v2165_v10  ;;  %2181 = vst [vmem:[%s3902_s2 + $0x9d] sm:$0x1] %v2164_v9 }
 0x1da   :  { %v2284_v14 = vrot.slane %v2270_v11, %v3261_v56  ;;  %v2285_v15 = vcombine.high %v2277_v12, %v2277_v12  ;;  %v2293_v16 = vrot.slane %v2277_v12, %v3261_v56  ;;  %2713 = vst.sshfl [vmem:[%s3902_s2 + $0xe] sm:$0x1 pattern:$0x73625140] %v2277_v12 }
 0x1db   :  { %2182 = vst [vmem:[%s3902_s2 + $0xb5] sm:$0x1] %v2166_v13 }
 0x1dc   :  { %v2286_v17 = vcombine.high %v2284_v14, %v2284_v14  ;;  %v2300_v18 = vrot.slane %v2284_v14, %v3261_v56  ;;  %2715 = vst.sshfl [vmem:[%s3902_s2 + $0x6e] sm:$0x1 pattern:$0x73625140] %v2284_v14  ;;  %v2307_v19 = vrot.slane %v2285_v15, %v3261_v56  ;;  %v2315_v20 = vcombine.high %v2293_v16, %v2293_v16 }
 0x1dd   :  { %2714 = vst.sshfl [vmem:[%s3902_s2 + $0x26] sm:$0x1 pattern:$0x73625140] %v2285_v15 }
 0x1de   :  { %v2314_v21 = vrot.slane %v2286_v17, %v3261_v56  ;;  %v2316_v22 = vcombine.high %v2300_v18, %v2300_v18  ;;  %2716 = vst.sshfl [vmem:[%s3902_s2 + $0x86] sm:$0x1 pattern:$0x73625140] %v2286_v17  ;;  %v2770_v23 = vpop.eup %2769  ;;  %v2317_v24 = vcombine.high %v2307_v19, %v2307_v19  ;;  %2329 = vst [vmem:[%s3902_s2 + $0x3e] sm:$0x1] %v2315_v20 }
 0x1df   :  { %v2415_v26 = vmul.f32 %v2770_v23, %v3759_v51 }
 0x1e0   :  { %v2318_v25 = vcombine.high %v2314_v21, %v2314_v21  ;;  %2333 = vst [vmem:[%s3902_s2 + $0x9e] sm:$0x1] %v2316_v22  ;;  %2330 = vst [vmem:[%s3902_s2 + $0x56] sm:$0x1] %v2317_v24 }
 0x1e1   :  { %v2417_v28 = vsel %vm2416_vm2, %v3759_v51, %v2415_v26 }
 0x1e2   :  { %2334 = vst [vmem:[%s3902_s2 + $0xb6] sm:$0x1] %v2318_v25  ;;  %v2420_v29 = vsel %vm2418_vm3, %v2419_v27, %v2417_v28 }
 0x1e3   :  { %v2772_v30 = vpop.eup %2771  ;;  %v2422_v31 = vcombine.high %v2420_v29, %v2420_v29  ;;  %v2429_v32 = vrot.slane %v2420_v29, %v3261_v56 }
 0x1e4   :  { %v2564_v33 = vmul.f32 %v2772_v30, %v3773_v0 }
 0x1e5   :  { %v2436_v34 = vrot.slane %v2422_v31, %v3261_v56  ;;  %v2437_v35 = vcombine.high %v2429_v32, %v2429_v32  ;;  %v2445_v36 = vrot.slane %v2429_v32, %v3261_v56  ;;  %2718 = vst.sshfl [vmem:[%s3902_s2 + $0xf] sm:$0x1 pattern:$0x73625140] %v2429_v32 }
 0x1e6   :  { %v2566_v37 = vsel %vm2565_vm4, %v3773_v0, %v2564_v33 }
 0x1e7   :  { %v2438_v39 = vcombine.high %v2436_v34, %v2436_v34  ;;  %v2452_v40 = vrot.slane %v2436_v34, %v3261_v56  ;;  %v2459_v41 = vrot.slane %v2437_v35, %v3261_v56  ;;  %v2467_v42 = vcombine.high %v2445_v36, %v2445_v36  ;;  %2719 = vst.sshfl [vmem:[%s3902_s2 + $0x27] sm:$0x1 pattern:$0x73625140] %v2437_v35 }
 0x1e8   :  { %2720 = vst.sshfl [vmem:[%s3902_s2 + $0x6f] sm:$0x1 pattern:$0x73625140] %v2436_v34  ;;  %v2569_v43 = vsel %vm2567_vm5, %v2568_v38, %v2566_v37 }
 0x1e9   :  { %v2466_v44 = vrot.slane %v2438_v39, %v3261_v56  ;;  %v2468_v45 = vcombine.high %v2452_v40, %v2452_v40  ;;  %v2469_v46 = vcombine.high %v2459_v41, %v2459_v41  ;;  %2481 = vst [vmem:[%s3902_s2 + $0x3f] sm:$0x1] %v2467_v42  ;;  %2721 = vst.sshfl [vmem:[%s3902_s2 + $0x87] sm:$0x1 pattern:$0x73625140] %v2438_v39 }
 0x1ea   :  { %v2571_v47 = vcombine.high %v2569_v43, %v2569_v43  ;;  %v2578_v48 = vrot.slane %v2569_v43, %v3261_v56 }
 0x1eb   :  { %v2470_v49 = vcombine.high %v2466_v44, %v2466_v44  ;;  %2482 = vst [vmem:[%s3902_s2 + $0x57] sm:$0x1] %v2469_v46  ;;  %2485 = vst [vmem:[%s3902_s2 + $0x9f] sm:$0x1] %v2468_v45 }
 0x1ec   :  { %v2585_v50 = vrot.slane %v2571_v47, %v3261_v56  ;;  %v2586_v51 = vcombine.high %v2578_v48, %v2578_v48  ;;  %v2594_v52 = vrot.slane %v2578_v48, %v3261_v56  ;;  %2723 = vst.sshfl [vmem:[%s3902_s2 + $0x10] sm:$0x1 pattern:$0x73625140] %v2578_v48 }
 0x1ed   :  { %2486 = vst [vmem:[%s3902_s2 + $0xb7] sm:$0x1] %v2470_v49 }
 0x1ee   :  { %v2587_v53 = vcombine.high %v2585_v50, %v2585_v50  ;;  %v2601_v54 = vrot.slane %v2585_v50, %v3261_v56  ;;  %2725 = vst.sshfl [vmem:[%s3902_s2 + $0x70] sm:$0x1 pattern:$0x73625140] %v2585_v50  ;;  %v2608_v55 = vrot.slane %v2586_v51, %v3261_v56  ;;  %v2616_v57 = vcombine.high %v2594_v52, %v2594_v52 }
 0x1ef   :  { %2724 = vst.sshfl [vmem:[%s3902_s2 + $0x28] sm:$0x1 pattern:$0x73625140] %v2586_v51 }
 0x1f0   :  { %v2615_v58 = vrot.slane %v2587_v53, %v3261_v56  ;;  %v2617_v59 = vcombine.high %v2601_v54, %v2601_v54  ;;  %2726 = vst.sshfl [vmem:[%s3902_s2 + $0x88] sm:$0x1 pattern:$0x73625140] %v2587_v53  ;;  %v2618_v60 = vcombine.high %v2608_v55, %v2608_v55  ;;  %2630 = vst [vmem:[%s3902_s2 + $0x40] sm:$0x1] %v2616_v57 }
 0x1f2   :  { %v2619_v61 = vcombine.high %v2615_v58, %v2615_v58  ;;  %2634 = vst [vmem:[%s3902_s2 + $0xa0] sm:$0x1] %v2617_v59  ;;  %2631 = vst [vmem:[%s3902_s2 + $0x58] sm:$0x1] %v2618_v60 }
 0x1f4   :  { %2635 = vst [vmem:[%s3902_s2 + $0xb8] sm:$0x1] %v2619_v61 }
 0x1f5   :  { %2640 = vsyncpa [#allocation3], 1 }
 0x1f6   :  { %2641 = vsyncpa [#allocation5], 1 }

</bundles_post_ra>
